<compile_context>
chip_gen: v5e
topology: v5e:2x2
jax: 0.10.0
libtpu: 0.0.40
codegen_flags: <defaults>
</compile_context>

<pallas_src>
import numpy as np
import jax
import jax.numpy as jnp
from jax.experimental import pallas as pl
from jax.experimental.pallas import tpu as pltpu


# ----------------------------- packed-weight helpers -----------------------------

def _pack_from_input(w_sub, off, K, D):
    """Weight (d_sub, O) applied to per-sample input features [off, off+d_sub)
    -> packed weight (K*D, K*O), block j maps sample-j features to sample-j outputs."""
    d_sub, O = w_sub.shape
    out = jnp.zeros((K * D, K * O), w_sub.dtype)
    for j in range(K):
        out = out.at[j * D + off : j * D + off + d_sub, j * O : (j + 1) * O].set(w_sub)
    return out


def _block_diag(w, K):
    """kron(I_K, W): hidden->hidden weight acting independently on each packed sample."""
    return jnp.kron(jnp.eye(K, dtype=w.dtype), w)


def _tile_bias(b, K):
    return jnp.tile(b.reshape(1, -1), (1, K))


def _pack_head(w_sub, col_off, K, out_per_sample=4):
    """Head weight (d_sub, O) writing into per-sample output columns [col_off, col_off+O)."""
    d_sub, O = w_sub.shape
    out = jnp.zeros((K * d_sub, K * out_per_sample), w_sub.dtype)
    for j in range(K):
        out = out.at[
            j * d_sub : (j + 1) * d_sub,
            j * out_per_sample + col_off : j * out_per_sample + col_off + O,
        ].set(w_sub)
    return out


# ----------------------------------- kernel --------------------------------------

def _make_kernel(num_mid, skip):
    """Fused MLP on lane-packed activations.  refs = (inp, *weights, out)."""

    def kernel(*refs):
        inp_ref = refs[0]
        o_ref = refs[-1]
        w_refs = refs[1:-1]
        inp = inp_ref[...]                                   # (tm/K, K*D)

        r = 0
        def take():
            nonlocal r
            v = w_refs[r][...]
            r += 1
            return v

        # first layer: relu(pts @ W0 + b0)  (pts selection baked into packed weight)
        w0 = take(); b0 = take()
        x = jnp.maximum(jnp.dot(inp, w0, preferred_element_type=jnp.float32) + b0, 0.0)

        # mid layers
        for i in range(num_mid):
            if i == skip:
                # cat([pts, x]) @ W == pts @ W[:P] + x @ W[P:]  (no lane concat needed)
                wp = take(); wx = take(); b = take()
                y = (jnp.dot(inp, wp, preferred_element_type=jnp.float32)
                     + jnp.dot(x, wx, preferred_element_type=jnp.float32) + b)
            else:
                w = take(); b = take()
                y = jnp.dot(x, w, preferred_element_type=jnp.float32) + b
            x = jnp.maximum(y, 0.0)

        # rgb branch
        wr1 = take(); br1 = take()
        x1 = jnp.dot(x, wr1, preferred_element_type=jnp.float32) + br1      # no ReLU

        wv = take(); wx2 = take(); b2 = take()
        x2 = jnp.maximum(jnp.dot(inp, wv, preferred_element_type=jnp.float32)
                         + jnp.dot(x1, wx2, preferred_element_type=jnp.float32) + b2, 0.0)

        # fused rgb/alpha head -> packed (tm/K, K*4) output, single lane-dense store
        wr3 = take(); wa = take(); bh = take()
        out = (jnp.dot(x2, wr3, preferred_element_type=jnp.float32)
               + jnp.dot(x, wa, preferred_element_type=jnp.float32) + bh)
        assert r == len(w_refs)
        o_ref[...] = out.astype(o_ref.dtype)

    return kernel


# ----------------------------------- wrapper -------------------------------------

def nerf_ff_pallas(inp, params, *, input_dim, input_view_dim, skip,
                   tm=1024, vmem_limit_bytes=None):
    N, D = inp.shape
    assert D == input_dim + input_view_dim
    P, V = input_dim, input_view_dim
    H = params["first"][0].shape[1]

    # lane packing factor: pack K samples per super-row so activations are 128-lane dense
    K = (128 // H) if (H <= 128 and 128 % H == 0) else 1
    while K > 1 and N % K != 0:
        K //= 2

    tm = min(tm, N)
    assert N % tm == 0, "N must be a multiple of the row tile (pad rows if ragged)"
    assert tm % K == 0 and (tm // K) % 8 == 0, "tm must be a multiple of 8*K"

    # ---- build packed weights (host side; all tiny) ----
    w0, b0 = params["first"]
    flat = [_pack_from_input(w0, 0, K, D), _tile_bias(b0, K)]
    for i, (w, b) in enumerate(params["mid"]):
        if i == skip:
            flat += [_pack_from_input(w[:P], 0, K, D), _block_diag(w[P:], K), _tile_bias(b, K)]
        else:
            flat += [_block_diag(w, K), _tile_bias(b, K)]
    wr1, br1 = params["rgb1"]
    flat += [_block_diag(wr1, K), _tile_bias(br1, K)]
    wr2, br2 = params["rgb2"]
    flat += [_pack_from_input(wr2[:V], P, K, D), _block_diag(wr2[V:], K), _tile_bias(br2, K)]
    wr3, br3 = params["rgb3"]
    wa, ba = params["alpha"]
    flat += [_pack_head(wr3, 0, K), _pack_head(wa, 3, K),
             jnp.tile(jnp.concatenate([br3.reshape(1, -1), ba.reshape(1, -1)], axis=-1), (1, K))]

    # ---- zero-copy lane packing of input / output ----
    inp_packed = inp.reshape(N // K, K * D)

    def full_spec(a):
        return pl.BlockSpec(a.shape, lambda i, _nd=a.ndim: (0,) * _nd)

    in_specs = [pl.BlockSpec((tm // K, K * D), lambda i: (i, 0))] + [full_spec(a) for a in flat]
    out_spec = pl.BlockSpec((tm // K, K * 4), lambda i: (i, 0))

    kernel = _make_kernel(len(params["mid"]), skip)

    compiler_params = pltpu.CompilerParams(
        dimension_semantics=("parallel",),
        vmem_limit_bytes=vmem_limit_bytes,
    )

    out_packed = pl.pallas_call(
        kernel,
        out_shape=jax.ShapeDtypeStruct((N // K, K * 4), inp.dtype),
        grid_spec=pltpu.PrefetchScalarGridSpec(
            num_scalar_prefetch=0,
            grid=(N // tm,),
            in_specs=in_specs,
            out_specs=out_spec,
        ),
        compiler_params=compiler_params,
    )(inp_packed, *flat)

    return out_packed.reshape(N, 4)


# ---------------------------- init + pure-JAX reference ---------------------------

def init_params(key, num_layers, input_dim, input_view_dim, hidden_dim, skip):
    """PyTorch nn.Linear default init; weights stored transposed as (in, out)."""

    def linear(k, in_f, out_f):
        kw, kb = jax.random.split(k)
        bound = 1.0 / np.sqrt(in_f)
        w = jax.random.uniform(kw, (in_f, out_f), jnp.float32, -bound, bound)
        b = jax.random.uniform(kb, (1, out_f), jnp.float32, -bound, bound)
        return w, b

    n_mid = num_layers - 1
    keys = jax.random.split(key, n_mid + 5)
    p = {"first": linear(keys[0], input_dim, hidden_dim)}
    mids = []
    for i in range(n_mid):
        in_f = hidden_dim + input_dim if i == skip else hidden_dim
        mids.append(linear(keys[1 + i], in_f, hidden_dim))
    p["mid"] = mids
    p["alpha"] = linear(keys[n_mid + 1], hidden_dim, 1)
    p["rgb1"] = linear(keys[n_mid + 2], hidden_dim, hidden_dim)
    p["rgb2"] = linear(keys[n_mid + 3], hidden_dim + input_view_dim, hidden_dim // 2)
    p["rgb3"] = linear(keys[n_mid + 4], hidden_dim // 2, 3)
    return p


def ref_forward(inp, params, *, input_dim, input_view_dim, skip):
    """Pure-JAX reference mirroring the PyTorch forward exactly."""
    pts = inp[:, :input_dim]
    view = inp[:, input_dim:input_dim + input_view_dim]
    w, b = params["first"]
    x = jax.nn.relu(pts @ w + b)
    for i, (w, b) in enumerate(params["mid"]):
        if i == skip:
            x = jnp.concatenate([pts, x], axis=-1)
        x = jax.nn.relu(x @ w + b)
    wa, ba = params["alpha"]
    a = x @ wa + ba
    wr1, br1 = params["rgb1"]
    x = x @ wr1 + br1
    wr2, br2 = params["rgb2"]
    x = jax.nn.relu(jnp.concatenate([view, x], axis=-1) @ wr2 + br2)
    wr3, br3 = params["rgb3"]
    rgb = x @ wr3 + br3
    return jnp.concatenate([rgb, a], axis=-1)


if __name__ == "__main__":
    num_layers, input_dim, input_view_dim, hidden_dim, skip = 4, 3, 3, 32, 1
    N = 4096            # rows; grid = N // tm = 4 steps (>= 2 per TC on v7x megacore)
    tm = 1024           # large row tile to amortize per-step pipeline overhead

    key = jax.random.PRNGKey(0)
    k_in, k_p = jax.random.split(key)
    inp = jax.random.uniform(k_in, (N, input_dim + input_view_dim), jnp.float32, -1.0, 1.0)
    params = init_params(k_p, num_layers, input_dim, input_view_dim, hidden_dim, skip)

    out = nerf_ff_pallas(inp, params, input_dim=input_dim,
                         input_view_dim=input_view_dim, skip=skip, tm=tm)
    out = jax.block_until_ready(out)

    ref = jax.block_until_ready(
        ref_forward(inp, params, input_dim=input_dim,
                    input_view_dim=input_view_dim, skip=skip))
    np.testing.assert_allclose(np.asarray(out), np.asarray(ref), rtol=1e-3, atol=1e-3)

    print("KERNEL_OK")
</pallas_src>

<mosaic_0001>
module attributes {stable_mosaic.version = 11 : i64} {
  func.func @kernel(%arg0: i32, %arg1: memref<256x24xf32, #tpu.memory_space<vmem>>, %arg2: memref<24x128xf32, #tpu.memory_space<vmem>>, %arg3: memref<1x128xf32, #tpu.memory_space<vmem>>, %arg4: memref<128x128xf32, #tpu.memory_space<vmem>>, %arg5: memref<1x128xf32, #tpu.memory_space<vmem>>, %arg6: memref<24x128xf32, #tpu.memory_space<vmem>>, %arg7: memref<128x128xf32, #tpu.memory_space<vmem>>, %arg8: memref<1x128xf32, #tpu.memory_space<vmem>>, %arg9: memref<128x128xf32, #tpu.memory_space<vmem>>, %arg10: memref<1x128xf32, #tpu.memory_space<vmem>>, %arg11: memref<128x128xf32, #tpu.memory_space<vmem>>, %arg12: memref<1x128xf32, #tpu.memory_space<vmem>>, %arg13: memref<24x64xf32, #tpu.memory_space<vmem>>, %arg14: memref<128x64xf32, #tpu.memory_space<vmem>>, %arg15: memref<1x64xf32, #tpu.memory_space<vmem>>, %arg16: memref<64x16xf32, #tpu.memory_space<vmem>>, %arg17: memref<128x16xf32, #tpu.memory_space<vmem>>, %arg18: memref<1x16xf32, #tpu.memory_space<vmem>>, %arg19: memref<256x16xf32, #tpu.memory_space<vmem>>) attributes {dimension_semantics = [#tpu.dimension_semantics<parallel>], iteration_bounds = array<i64: 4>, scalar_prefetch = 0 : i64, scratch_operands = 0 : i64, tpu.core_type = #tpu.core_type<tc>, window_params = [{transform_indices = @transform_0, window_bounds = array<i64: 256, 24>}, {pipeline_mode = #tpu.pipeline_mode<synchronous>, transform_indices = @transform_1, window_bounds = array<i64: 24, 128>}, {pipeline_mode = #tpu.pipeline_mode<synchronous>, transform_indices = @transform_2, window_bounds = array<i64: 1, 128>}, {pipeline_mode = #tpu.pipeline_mode<synchronous>, transform_indices = @transform_3, window_bounds = array<i64: 128, 128>}, {pipeline_mode = #tpu.pipeline_mode<synchronous>, transform_indices = @transform_4, window_bounds = array<i64: 1, 128>}, {pipeline_mode = #tpu.pipeline_mode<synchronous>, transform_indices = @transform_5, window_bounds = array<i64: 24, 128>}, {pipeline_mode = #tpu.pipeline_mode<synchronous>, transform_indices = @transform_6, window_bounds = array<i64: 128, 128>}, {pipeline_mode = #tpu.pipeline_mode<synchronous>, transform_indices = @transform_7, window_bounds = array<i64: 1, 128>}, {pipeline_mode = #tpu.pipeline_mode<synchronous>, transform_indices = @transform_8, window_bounds = array<i64: 128, 128>}, {pipeline_mode = #tpu.pipeline_mode<synchronous>, transform_indices = @transform_9, window_bounds = array<i64: 1, 128>}, {pipeline_mode = #tpu.pipeline_mode<synchronous>, transform_indices = @transform_10, window_bounds = array<i64: 128, 128>}, {pipeline_mode = #tpu.pipeline_mode<synchronous>, transform_indices = @transform_11, window_bounds = array<i64: 1, 128>}, {pipeline_mode = #tpu.pipeline_mode<synchronous>, transform_indices = @transform_12, window_bounds = array<i64: 24, 64>}, {pipeline_mode = #tpu.pipeline_mode<synchronous>, transform_indices = @transform_13, window_bounds = array<i64: 128, 64>}, {pipeline_mode = #tpu.pipeline_mode<synchronous>, transform_indices = @transform_14, window_bounds = array<i64: 1, 64>}, {pipeline_mode = #tpu.pipeline_mode<synchronous>, transform_indices = @transform_15, window_bounds = array<i64: 64, 16>}, {pipeline_mode = #tpu.pipeline_mode<synchronous>, transform_indices = @transform_16, window_bounds = array<i64: 128, 16>}, {pipeline_mode = #tpu.pipeline_mode<synchronous>, transform_indices = @transform_17, window_bounds = array<i64: 1, 16>}, {transform_indices = @transform_18, window_bounds = array<i64: 256, 16>}]} {
    %c0 = arith.constant 0 : index
    %c0_0 = arith.constant 0 : index
    %0 = vector.load %arg1[%c0, %c0_0] : memref<256x24xf32, #tpu.memory_space<vmem>>, vector<256x24xf32>
    %c0_1 = arith.constant 0 : index
    %c0_2 = arith.constant 0 : index
    %1 = vector.load %arg2[%c0_1, %c0_2] : memref<24x128xf32, #tpu.memory_space<vmem>>, vector<24x128xf32>
    %c0_3 = arith.constant 0 : index
    %c0_4 = arith.constant 0 : index
    %2 = vector.load %arg3[%c0_3, %c0_4] : memref<1x128xf32, #tpu.memory_space<vmem>>, vector<1x128xf32>
    %cst = arith.constant dense<0.000000e+00> : vector<256x128xf32>
    %3 = tpu.matmul %0, %1, %cst {dimension_numbers = #tpu.dot_dimension_numbers<[1], [0], [0], [1], [0, 0, 1, 1], [], []>} : vector<256x24xf32>, vector<24x128xf32>, vector<256x128xf32> -> vector<256x128xf32>
    %4 = vector.broadcast %2 : vector<1x128xf32> to vector<256x128xf32>
    %5 = arith.addf %3, %4 : vector<256x128xf32>
    %cst_5 = arith.constant 0.000000e+00 : f32
    %6 = vector.broadcast %cst_5 : f32 to vector<256x128xf32>
    %7 = arith.maximumf %5, %6 : vector<256x128xf32>
    %c0_6 = arith.constant 0 : index
    %c0_7 = arith.constant 0 : index
    %8 = vector.load %arg4[%c0_6, %c0_7] : memref<128x128xf32, #tpu.memory_space<vmem>>, vector<128x128xf32>
    %c0_8 = arith.constant 0 : index
    %c0_9 = arith.constant 0 : index
    %9 = vector.load %arg5[%c0_8, %c0_9] : memref<1x128xf32, #tpu.memory_space<vmem>>, vector<1x128xf32>
    %cst_10 = arith.constant dense<0.000000e+00> : vector<256x128xf32>
    %10 = tpu.matmul %7, %8, %cst_10 {dimension_numbers = #tpu.dot_dimension_numbers<[1], [0], [0], [1], [0, 0, 1, 1], [], []>} : vector<256x128xf32>, vector<128x128xf32>, vector<256x128xf32> -> vector<256x128xf32>
    %11 = vector.broadcast %9 : vector<1x128xf32> to vector<256x128xf32>
    %12 = arith.addf %10, %11 : vector<256x128xf32>
    %cst_11 = arith.constant 0.000000e+00 : f32
    %13 = vector.broadcast %cst_11 : f32 to vector<256x128xf32>
    %14 = arith.maximumf %12, %13 : vector<256x128xf32>
    %c0_12 = arith.constant 0 : index
    %c0_13 = arith.constant 0 : index
    %15 = vector.load %arg6[%c0_12, %c0_13] : memref<24x128xf32, #tpu.memory_space<vmem>>, vector<24x128xf32>
    %c0_14 = arith.constant 0 : index
    %c0_15 = arith.constant 0 : index
    %16 = vector.load %arg7[%c0_14, %c0_15] : memref<128x128xf32, #tpu.memory_space<vmem>>, vector<128x128xf32>
    %c0_16 = arith.constant 0 : index
    %c0_17 = arith.constant 0 : index
    %17 = vector.load %arg8[%c0_16, %c0_17] : memref<1x128xf32, #tpu.memory_space<vmem>>, vector<1x128xf32>
    %cst_18 = arith.constant dense<0.000000e+00> : vector<256x128xf32>
    %18 = tpu.matmul %0, %15, %cst_18 {dimension_numbers = #tpu.dot_dimension_numbers<[1], [0], [0], [1], [0, 0, 1, 1], [], []>} : vector<256x24xf32>, vector<24x128xf32>, vector<256x128xf32> -> vector<256x128xf32>
    %cst_19 = arith.constant dense<0.000000e+00> : vector<256x128xf32>
    %19 = tpu.matmul %14, %16, %cst_19 {dimension_numbers = #tpu.dot_dimension_numbers<[1], [0], [0], [1], [0, 0, 1, 1], [], []>} : vector<256x128xf32>, vector<128x128xf32>, vector<256x128xf32> -> vector<256x128xf32>
    %20 = arith.addf %18, %19 : vector<256x128xf32>
    %21 = vector.broadcast %17 : vector<1x128xf32> to vector<256x128xf32>
    %22 = arith.addf %20, %21 : vector<256x128xf32>
    %cst_20 = arith.constant 0.000000e+00 : f32
    %23 = vector.broadcast %cst_20 : f32 to vector<256x128xf32>
    %24 = arith.maximumf %22, %23 : vector<256x128xf32>
    %c0_21 = arith.constant 0 : index
    %c0_22 = arith.constant 0 : index
    %25 = vector.load %arg9[%c0_21, %c0_22] : memref<128x128xf32, #tpu.memory_space<vmem>>, vector<128x128xf32>
    %c0_23 = arith.constant 0 : index
    %c0_24 = arith.constant 0 : index
    %26 = vector.load %arg10[%c0_23, %c0_24] : memref<1x128xf32, #tpu.memory_space<vmem>>, vector<1x128xf32>
    %cst_25 = arith.constant dense<0.000000e+00> : vector<256x128xf32>
    %27 = tpu.matmul %24, %25, %cst_25 {dimension_numbers = #tpu.dot_dimension_numbers<[1], [0], [0], [1], [0, 0, 1, 1], [], []>} : vector<256x128xf32>, vector<128x128xf32>, vector<256x128xf32> -> vector<256x128xf32>
    %28 = vector.broadcast %26 : vector<1x128xf32> to vector<256x128xf32>
    %29 = arith.addf %27, %28 : vector<256x128xf32>
    %cst_26 = arith.constant 0.000000e+00 : f32
    %30 = vector.broadcast %cst_26 : f32 to vector<256x128xf32>
    %31 = arith.maximumf %29, %30 : vector<256x128xf32>
    %c0_27 = arith.constant 0 : index
    %c0_28 = arith.constant 0 : index
    %32 = vector.load %arg11[%c0_27, %c0_28] : memref<128x128xf32, #tpu.memory_space<vmem>>, vector<128x128xf32>
    %c0_29 = arith.constant 0 : index
    %c0_30 = arith.constant 0 : index
    %33 = vector.load %arg12[%c0_29, %c0_30] : memref<1x128xf32, #tpu.memory_space<vmem>>, vector<1x128xf32>
    %cst_31 = arith.constant dense<0.000000e+00> : vector<256x128xf32>
    %34 = tpu.matmul %31, %32, %cst_31 {dimension_numbers = #tpu.dot_dimension_numbers<[1], [0], [0], [1], [0, 0, 1, 1], [], []>} : vector<256x128xf32>, vector<128x128xf32>, vector<256x128xf32> -> vector<256x128xf32>
    %35 = vector.broadcast %33 : vector<1x128xf32> to vector<256x128xf32>
    %36 = arith.addf %34, %35 : vector<256x128xf32>
    %c0_32 = arith.constant 0 : index
    %c0_33 = arith.constant 0 : index
    %37 = vector.load %arg13[%c0_32, %c0_33] : memref<24x64xf32, #tpu.memory_space<vmem>>, vector<24x64xf32>
    %c0_34 = arith.constant 0 : index
    %c0_35 = arith.constant 0 : index
    %38 = vector.load %arg14[%c0_34, %c0_35] : memref<128x64xf32, #tpu.memory_space<vmem>>, vector<128x64xf32>
    %c0_36 = arith.constant 0 : index
    %c0_37 = arith.constant 0 : index
    %39 = vector.load %arg15[%c0_36, %c0_37] : memref<1x64xf32, #tpu.memory_space<vmem>>, vector<1x64xf32>
    %cst_38 = arith.constant dense<0.000000e+00> : vector<256x64xf32>
    %40 = tpu.matmul %0, %37, %cst_38 {dimension_numbers = #tpu.dot_dimension_numbers<[1], [0], [0], [1], [0, 0, 1, 1], [], []>} : vector<256x24xf32>, vector<24x64xf32>, vector<256x64xf32> -> vector<256x64xf32>
    %cst_39 = arith.constant dense<0.000000e+00> : vector<256x64xf32>
    %41 = tpu.matmul %36, %38, %cst_39 {dimension_numbers = #tpu.dot_dimension_numbers<[1], [0], [0], [1], [0, 0, 1, 1], [], []>} : vector<256x128xf32>, vector<128x64xf32>, vector<256x64xf32> -> vector<256x64xf32>
    %42 = arith.addf %40, %41 : vector<256x64xf32>
    %43 = vector.broadcast %39 : vector<1x64xf32> to vector<256x64xf32>
    %44 = arith.addf %42, %43 : vector<256x64xf32>
    %cst_40 = arith.constant 0.000000e+00 : f32
    %45 = vector.broadcast %cst_40 : f32 to vector<256x64xf32>
    %46 = arith.maximumf %44, %45 : vector<256x64xf32>
    %c0_41 = arith.constant 0 : index
    %c0_42 = arith.constant 0 : index
    %47 = vector.load %arg16[%c0_41, %c0_42] : memref<64x16xf32, #tpu.memory_space<vmem>>, vector<64x16xf32>
    %c0_43 = arith.constant 0 : index
    %c0_44 = arith.constant 0 : index
    %48 = vector.load %arg17[%c0_43, %c0_44] : memref<128x16xf32, #tpu.memory_space<vmem>>, vector<128x16xf32>
    %c0_45 = arith.constant 0 : index
    %c0_46 = arith.constant 0 : index
    %49 = vector.load %arg18[%c0_45, %c0_46] : memref<1x16xf32, #tpu.memory_space<vmem>>, vector<1x16xf32>
    %cst_47 = arith.constant dense<0.000000e+00> : vector<256x16xf32>
    %50 = tpu.matmul %46, %47, %cst_47 {dimension_numbers = #tpu.dot_dimension_numbers<[1], [0], [0], [1], [0, 0, 1, 1], [], []>} : vector<256x64xf32>, vector<64x16xf32>, vector<256x16xf32> -> vector<256x16xf32>
    %cst_48 = arith.constant dense<0.000000e+00> : vector<256x16xf32>
    %51 = tpu.matmul %31, %48, %cst_48 {dimension_numbers = #tpu.dot_dimension_numbers<[1], [0], [0], [1], [0, 0, 1, 1], [], []>} : vector<256x128xf32>, vector<128x16xf32>, vector<256x16xf32> -> vector<256x16xf32>
    %52 = arith.addf %50, %51 : vector<256x16xf32>
    %53 = vector.broadcast %49 : vector<1x16xf32> to vector<256x16xf32>
    %54 = arith.addf %52, %53 : vector<256x16xf32>
    %c0_49 = arith.constant 0 : index
    %c0_50 = arith.constant 0 : index
    %55 = vector.load %arg19[%c0_49, %c0_50] : memref<256x16xf32, #tpu.memory_space<vmem>>, vector<256x16xf32>
    tpu.vector_store %arg19[%c0_49, %c0_50], %54 {strides = array<i32>} : memref<256x16xf32, #tpu.memory_space<vmem>>, vector<256x16xf32>,
    return
  }
  func.func @transform_0(%arg0: i32) -> (i32, i32) {
    %c0_i32 = arith.constant 0 : i32
    %c0_i32_0 = arith.constant 0 : i32
    return %arg0, %c0_i32 : i32, i32
  }
  func.func @transform_1(%arg0: i32) -> (i32, i32) {
    %c0_i32 = arith.constant 0 : i32
    %c0_i32_0 = arith.constant 0 : i32
    %c0_i32_1 = arith.constant 0 : i32
    return %c0_i32, %c0_i32_0 : i32, i32
  }
  func.func @transform_2(%arg0: i32) -> (i32, i32) {
    %c0_i32 = arith.constant 0 : i32
    %c0_i32_0 = arith.constant 0 : i32
    %c0_i32_1 = arith.constant 0 : i32
    return %c0_i32, %c0_i32_0 : i32, i32
  }
  func.func @transform_3(%arg0: i32) -> (i32, i32) {
    %c0_i32 = arith.constant 0 : i32
    %c0_i32_0 = arith.constant 0 : i32
    %c0_i32_1 = arith.constant 0 : i32
    return %c0_i32, %c0_i32_0 : i32, i32
  }
  func.func @transform_4(%arg0: i32) -> (i32, i32) {
    %c0_i32 = arith.constant 0 : i32
    %c0_i32_0 = arith.constant 0 : i32
    %c0_i32_1 = arith.constant 0 : i32
    return %c0_i32, %c0_i32_0 : i32, i32
  }
  func.func @transform_5(%arg0: i32) -> (i32, i32) {
    %c0_i32 = arith.constant 0 : i32
    %c0_i32_0 = arith.constant 0 : i32
    %c0_i32_1 = arith.constant 0 : i32
    return %c0_i32, %c0_i32_0 : i32, i32
  }
  func.func @transform_6(%arg0: i32) -> (i32, i32) {
    %c0_i32 = arith.constant 0 : i32
    %c0_i32_0 = arith.constant 0 : i32
    %c0_i32_1 = arith.constant 0 : i32
    return %c0_i32, %c0_i32_0 : i32, i32
  }
  func.func @transform_7(%arg0: i32) -> (i32, i32) {
    %c0_i32 = arith.constant 0 : i32
    %c0_i32_0 = arith.constant 0 : i32
    %c0_i32_1 = arith.constant 0 : i32
    return %c0_i32, %c0_i32_0 : i32, i32
  }
  func.func @transform_8(%arg0: i32) -> (i32, i32) {
    %c0_i32 = arith.constant 0 : i32
    %c0_i32_0 = arith.constant 0 : i32
    %c0_i32_1 = arith.constant 0 : i32
    return %c0_i32, %c0_i32_0 : i32, i32
  }
  func.func @transform_9(%arg0: i32) -> (i32, i32) {
    %c0_i32 = arith.constant 0 : i32
    %c0_i32_0 = arith.constant 0 : i32
    %c0_i32_1 = arith.constant 0 : i32
    return %c0_i32, %c0_i32_0 : i32, i32
  }
  func.func @transform_10(%arg0: i32) -> (i32, i32) {
    %c0_i32 = arith.constant 0 : i32
    %c0_i32_0 = arith.constant 0 : i32
    %c0_i32_1 = arith.constant 0 : i32
    return %c0_i32, %c0_i32_0 : i32, i32
  }
  func.func @transform_11(%arg0: i32) -> (i32, i32) {
    %c0_i32 = arith.constant 0 : i32
    %c0_i32_0 = arith.constant 0 : i32
    %c0_i32_1 = arith.constant 0 : i32
    return %c0_i32, %c0_i32_0 : i32, i32
  }
  func.func @transform_12(%arg0: i32) -> (i32, i32) {
    %c0_i32 = arith.constant 0 : i32
    %c0_i32_0 = arith.constant 0 : i32
    %c0_i32_1 = arith.constant 0 : i32
    return %c0_i32, %c0_i32_0 : i32, i32
  }
  func.func @transform_13(%arg0: i32) -> (i32, i32) {
    %c0_i32 = arith.constant 0 : i32
    %c0_i32_0 = arith.constant 0 : i32
    %c0_i32_1 = arith.constant 0 : i32
    return %c0_i32, %c0_i32_0 : i32, i32
  }
  func.func @transform_14(%arg0: i32) -> (i32, i32) {
    %c0_i32 = arith.constant 0 : i32
    %c0_i32_0 = arith.constant 0 : i32
    %c0_i32_1 = arith.constant 0 : i32
    return %c0_i32, %c0_i32_0 : i32, i32
  }
  func.func @transform_15(%arg0: i32) -> (i32, i32) {
    %c0_i32 = arith.constant 0 : i32
    %c0_i32_0 = arith.constant 0 : i32
    %c0_i32_1 = arith.constant 0 : i32
    return %c0_i32, %c0_i32_0 : i32, i32
  }
  func.func @transform_16(%arg0: i32) -> (i32, i32) {
    %c0_i32 = arith.constant 0 : i32
    %c0_i32_0 = arith.constant 0 : i32
    %c0_i32_1 = arith.constant 0 : i32
    return %c0_i32, %c0_i32_0 : i32, i32
  }
  func.func @transform_17(%arg0: i32) -> (i32, i32) {
    %c0_i32 = arith.constant 0 : i32
    %c0_i32_0 = arith.constant 0 : i32
    %c0_i32_1 = arith.constant 0 : i32
    return %c0_i32, %c0_i32_0 : i32, i32
  }
  func.func @transform_18(%arg0: i32) -> (i32, i32) {
    %c0_i32 = arith.constant 0 : i32
    %c0_i32_0 = arith.constant 0 : i32
    return %arg0, %c0_i32 : i32, i32
  }
}

</mosaic_0001>

<bundles_post_ra>
// kernel: tpu_custom_call.1
= control target key start
LH: loop header
LB: loop body
LE: loop exit
PB: predicated region body
PF: predicated region fallthrough
CT: control target
= control target key end

     0   :  { %s2719_s27 = smov 0   ;;  %s4235_s0 = inlined_call_operand.vmem [shape: f32[1024,24], index: 0, kind: input, shape index: {}]   ;;  %s4236_s1 = inlined_call_operand.vmem [shape: f32[24,128], index: 1, kind: input, shape index: {}]   ;;  %s4237_s2 = inlined_call_operand.vmem [shape: f32[1,128], index: 2, kind: input, shape index: {}]   ;;  %s4238_s3 = inlined_call_operand.vmem [shape: f32[128,128], index: 3, kind: input, shape index: {}]   ;;  %s4239_s4 = inlined_call_operand.vmem [shape: f32[1,128], index: 4, kind: input, shape index: {}]   ;;  %s4240_s5 = inlined_call_operand.vmem [shape: f32[24,128], index: 5, kind: input, shape index: {}]   ;;  %s4241_s6 = inlined_call_operand.vmem [shape: f32[128,128], index: 6, kind: input, shape index: {}]   ;;  %s4242_s7 = inlined_call_operand.vmem [shape: f32[1,128], index: 7, kind: input, shape index: {}]   ;;  %s4243_s8 = inlined_call_operand.vmem [shape: f32[128,128], index: 8, kind: input, shape index: {}]   ;;  %s4244_s9 = inlined_call_operand.vmem [shape: f32[1,128], index: 9, kind: input, shape index: {}]   ;;  %s4245_s10 = inlined_call_operand.vmem [shape: f32[128,128], index: 10, kind: input, shape index: {}]   ;;  %s4246_s11 = inlined_call_operand.vmem [shape: f32[1,128], index: 11, kind: input, shape index: {}]   ;;  %s4247_s12 = inlined_call_operand.vmem [shape: f32[24,64], index: 12, kind: input, shape index: {}]   ;;  %s4248_s13 = inlined_call_operand.vmem [shape: f32[128,64], index: 13, kind: input, shape index: {}]   ;;  %s4249_s14 = inlined_call_operand.vmem [shape: f32[1,64], index: 14, kind: input, shape index: {}]   ;;  %s4250_s15 = inlined_call_operand.vmem [shape: f32[64,16], index: 15, kind: input, shape index: {}]   ;;  %s4251_s16 = inlined_call_operand.vmem [shape: f32[128,16], index: 16, kind: input, shape index: {}]   ;;  %s4252_s17 = inlined_call_operand.vmem [shape: f32[1,16], index: 17, kind: input, shape index: {}]   ;;  %s4253_s18 = inlined_call_operand.vmem [shape: f32[1024,16], index: 18, kind: output, shape index: {}]  }
   0x1   :  { %4255 = sst [smem:[#allocation2_spill]] %s4235_s0 }
   0x2   :  { %4256 = sst [smem:[#allocation3_spill]] %s4236_s1 }
   0x3   :  { %4257 = sst [smem:[#allocation4_spill]] %s4237_s2 }
   0x4 LB: > { %s2421_s28 = sadd.s32 4294967295, %s2622_s27   ;;  %p2425_p0 = scmp.ge.s32.totalorder %s2622_s27, 1  ;;  %s2622_s27 = sphi %s2719_s27, %s28_s27  }
   0x5   : > { %p513_p1 = scmp.lt.s32.totalorder %s2622_s27, 5 }
   0x7   : > { %p514_p2 = pnand %p2425_p0, %p513_p1 }
   0x8   : > { %s4258_s0 = sld [smem:[#allocation3_spill]] (!%p514_p2)  ;;  %s2426_s20 = sshll.u32 (!%p514_p2), %s2421_s28, 5 }
   0x9   : > { %517 = sbr.rel (%p514_p2) target bundleno = 1711 (0x6af), region = 92  ;;  %p568_p3 = scmp.lt.s32.totalorder (!%p514_p2), %s2426_s20, 127 }
   0xa   : > { %s4259_s28 = sld [smem:[#allocation2_spill]] (!%p514_p2) }
   0xb   : > { %s4260_s1 = sld [smem:[#allocation4_spill]] (!%p514_p2) }
   0xe   : > { %v613_v0 = vld [vmem:[%s4258_s0 + $0x10] sm:$0xff]  ;;  %v612_v1 = vld [vmem:[%s4258_s0 + $0x8] sm:$0xff]  ;;  %v611_v2 = vld [vmem:[%s4258_s0] sm:$0xff]  ;;  %s4262_s20 = smov (!%p568_p3, %s2426_s20), 127  ;;  %vm618_vm0 = vcmask 195584   ;;  %vm2087_vm1 = vcmask 523264  }
   0xf   : > { %728 = vmatpush.msra.mxu0 %v613_v0  ;;  %2560 = vmatpush.msra.mxu1 %v613_v0  ;;  %v875_v3 = vld [vmem:[%s4238_s3 + $0x78] sm:$0xff]  ;;  %s2427_s24 = sshll.u32 %s4262_s20, 3  ;;  %v874_v4 = vld [vmem:[%s4238_s3 + $0x70] sm:$0xff]  ;;  %v873_v7 = vld [vmem:[%s4238_s3 + $0x68] sm:$0xff]  ;;  %vm2332_vm2 = vcmask 130048  }
  0x10   : > { %s2747_s29 = scalar_lea.vmem %s4259_s28, %s2427_s24  ;;  %v872_v8 = vld [vmem:[%s4238_s3 + $0x60] sm:$0xff]  ;;  %v871_v11 = vld [vmem:[%s4238_s3 + $0x58] sm:$0xff]  ;;  %v870_v14 = vld [vmem:[%s4238_s3 + $0x50] sm:$0xff]  ;;  %s4084_s22 = scalar_lea.vmem %s4253_s18, %s2427_s24 }
  0x11   : > { %729 = vmatpush.msra.mxu0 %v612_v1  ;;  %2561 = vmatpush.msra.mxu1 %v612_v1  ;;  %v2753_v5 = vld [vmem:[%s2747_s29] sm:$0xff]  ;;  %v2756_v6 = vld [vmem:[%s2747_s29 + $0x88] sm:$0xff]  ;;  %v2772_v10 = vld [vmem:[%s2747_s29 + $0x90] sm:$0xff] }
  0x12   : > { %v2769_v9 = vld [vmem:[%s2747_s29 + $0x8] sm:$0xff]  ;;  %v2782_v12 = vld [vmem:[%s2747_s29 + $0x10] sm:$0xff]  ;;  %v2785_v13 = vld [vmem:[%s2747_s29 + $0x98] sm:$0xff] }
  0x13   : > { %730 = vmatpush.msra.mxu0 %v611_v2  ;;  %2562 = vmatpush.msra.mxu1 %v611_v2  ;;  %v869_v15 = vld [vmem:[%s4238_s3 + $0x48] sm:$0xff]  ;;  %v2798_v16 = vld [vmem:[%s2747_s29 + $0x18] sm:$0xff]  ;;  %v2801_v17 = vld [vmem:[%s2747_s29 + $0xa0] sm:$0xff] }
  0x14   : > { %2430 = vmatmul.msk.f32.vlgmr.msra.gmra.mxu0 %vm618_vm0, %v2753_v5  ;;  %2447 = vmatmul.msk.f32.vlgmr.msra.gmra.mxu1 %vm618_vm0, %v2756_v6  ;;  %v868_v18 = vld [vmem:[%s4238_s3 + $0x40] sm:$0xff]  ;;  %v2814_v20 = vld [vmem:[%s2747_s29 + $0xa8] sm:$0xff]  ;;  %v867_v21 = vld [vmem:[%s4238_s3 + $0x38] sm:$0xff] }
  0x15   : > { %880 = vmatpush.msrb.mxu1 %v875_v3  ;;  %v2811_v19 = vld [vmem:[%s2747_s29 + $0x20] sm:$0xff]  ;;  %v2824_v22 = vld [vmem:[%s2747_s29 + $0x28] sm:$0xff]  ;;  %v2827_v23 = vld [vmem:[%s2747_s29 + $0xb0] sm:$0xff] }
  0x16   : > { %v866_v24 = vld [vmem:[%s4238_s3 + $0x30] sm:$0xff]  ;;  %v2840_v26 = vld [vmem:[%s2747_s29 + $0xb8] sm:$0xff]  ;;  %v865_v27 = vld [vmem:[%s4238_s3 + $0x28] sm:$0xff] }
  0x17   : > { %881 = vmatpush.msrb.mxu1 %v874_v4  ;;  %v2837_v25 = vld [vmem:[%s2747_s29 + $0x30] sm:$0xff]  ;;  %v2850_v28 = vld [vmem:[%s2747_s29 + $0x38] sm:$0xff]  ;;  %v2853_v29 = vld [vmem:[%s2747_s29 + $0xc0] sm:$0xff] }
  0x18   : > { %v864_v30 = vld [vmem:[%s4238_s3 + $0x20] sm:$0xff]  ;;  %v2866_v32 = vld [vmem:[%s2747_s29 + $0xc8] sm:$0xff]  ;;  %v863_v33 = vld [vmem:[%s4238_s3 + $0x18] sm:$0xff] }
  0x19   : > { %882 = vmatpush.msrb.mxu1 %v873_v7  ;;  %v2863_v31 = vld [vmem:[%s2747_s29 + $0x40] sm:$0xff]  ;;  %v2876_v34 = vld [vmem:[%s2747_s29 + $0x48] sm:$0xff]  ;;  %v2879_v35 = vld [vmem:[%s2747_s29 + $0xd0] sm:$0xff] }
  0x1a   : > { %v862_v36 = vld [vmem:[%s4238_s3 + $0x10] sm:$0xff]  ;;  %v2892_v38 = vld [vmem:[%s2747_s29 + $0xd8] sm:$0xff]  ;;  %v861_v39 = vld [vmem:[%s4238_s3 + $0x8] sm:$0xff] }
  0x1b   : > { %883 = vmatpush.msrb.mxu1 %v872_v8  ;;  %v2889_v37 = vld [vmem:[%s2747_s29 + $0x50] sm:$0xff]  ;;  %v2902_v40 = vld [vmem:[%s2747_s29 + $0x58] sm:$0xff]  ;;  %v2905_v41 = vld [vmem:[%s2747_s29 + $0xe0] sm:$0xff] }
  0x1c   : > { %2431 = vmatmul.msk.f32.gmra.mxu0 %vm618_vm0, %v2769_v9  ;;  %2448 = vmatmul.msk.f32.gmra.mxu1 %vm618_vm0, %v2772_v10  ;;  %v860_v42 = vld [vmem:[%s4238_s3] sm:$0xff]  ;;  %v2918_v44 = vld [vmem:[%s2747_s29 + $0xe8] sm:$0xff]  ;;  %v2928_v46 = vld [vmem:[%s2747_s29 + $0xf0] sm:$0xff] }
  0x1d   : > { %884 = vmatpush.msrb.mxu1 %v871_v11  ;;  %v2915_v43 = vld [vmem:[%s2747_s29 + $0x60] sm:$0xff]  ;;  %v2925_v45 = vld [vmem:[%s2747_s29 + $0x68] sm:$0xff]  ;;  %v2935_v47 = vld [vmem:[%s2747_s29 + $0x70] sm:$0xff] }
  0x1e   : > { %v2938_v48 = vld [vmem:[%s2747_s29 + $0xf8] sm:$0xff]  ;;  %v2952_v50 = vld [vmem:[%s4260_s1] ss:$0 sm:$0xff] }
  0x1f   : > { %885 = vmatpush.msrb.mxu1 %v870_v14  ;;  %v2945_v49 = vld [vmem:[%s2747_s29 + $0x78] sm:$0xff]  ;;  %v2955_v52 = vld [vmem:[%s2747_s29 + $0x80] sm:$0xff] }
  0x21   : > { %886 = vmatpush.msrb.mxu1 %v869_v15 }
  0x23   : > { %887 = vmatpush.msrb.mxu1 %v868_v18 }
  0x24   : > { %2432 = vmatmul.msk.f32.gmra.mxu0 %vm618_vm0, %v2782_v12  ;;  %2449 = vmatmul.msk.f32.gmra.mxu1 %vm618_vm0, %v2785_v13 }
  0x25   : > { %888 = vmatpush.msrb.mxu1 %v867_v21 }
  0x27   : > { %889 = vmatpush.msrb.mxu1 %v866_v24 }
  0x29   : > { %890 = vmatpush.msrb.mxu1 %v865_v27 }
  0x2b   : > { %891 = vmatpush.msrb.mxu1 %v864_v30 }
  0x2c   : > { %2433 = vmatmul.msk.f32.gmra.mxu0 %vm618_vm0, %v2798_v16  ;;  %2450 = vmatmul.msk.f32.gmra.mxu1 %vm618_vm0, %v2801_v17 }
  0x2d   : > { %892 = vmatpush.msrb.mxu1 %v863_v33 }
  0x2f   : > { %893 = vmatpush.msrb.mxu1 %v862_v36 }
  0x31   : > { %894 = vmatpush.msrb.mxu1 %v861_v39 }
  0x33   : > { %895 = vmatpush.msrb.mxu1 %v860_v42 }
  0x34   : > { %2434 = vmatmul.msk.f32.gmra.mxu0 %vm618_vm0, %v2811_v19  ;;  %2451 = vmatmul.msk.f32.gmra.mxu1 %vm618_vm0, %v2814_v20 }
  0x3c   : > { %2435 = vmatmul.msk.f32.gmra.mxu0 %vm618_vm0, %v2824_v22  ;;  %2452 = vmatmul.msk.f32.gmra.mxu1 %vm618_vm0, %v2827_v23 }
  0x44   : > { %2436 = vmatmul.msk.f32.gmra.mxu0 %vm618_vm0, %v2837_v25  ;;  %2453 = vmatmul.msk.f32.gmra.mxu1 %vm618_vm0, %v2840_v26 }
  0x4c   : > { %2437 = vmatmul.msk.f32.gmra.mxu0 %vm618_vm0, %v2850_v28  ;;  %2454 = vmatmul.msk.f32.gmra.mxu1 %vm618_vm0, %v2853_v29 }
  0x54   : > { %2438 = vmatmul.msk.f32.gmra.mxu0 %vm618_vm0, %v2863_v31  ;;  %2455 = vmatmul.msk.f32.gmra.mxu1 %vm618_vm0, %v2866_v32 }
  0x5c   : > { %2439 = vmatmul.msk.f32.gmra.mxu0 %vm618_vm0, %v2876_v34  ;;  %2456 = vmatmul.msk.f32.gmra.mxu1 %vm618_vm0, %v2879_v35 }
  0x64   : > { %2440 = vmatmul.msk.f32.gmra.mxu0 %vm618_vm0, %v2889_v37  ;;  %2457 = vmatmul.msk.f32.gmra.mxu1 %vm618_vm0, %v2892_v38 }
  0x6c   : > { %2441 = vmatmul.msk.f32.gmra.mxu0 %vm618_vm0, %v2902_v40  ;;  %2458 = vmatmul.msk.f32.gmra.mxu1 %vm618_vm0, %v2905_v41 }
  0x74   : > { %2442 = vmatmul.msk.f32.gmra.mxu0 %vm618_vm0, %v2915_v43  ;;  %2459 = vmatmul.msk.f32.gmra.mxu1 %vm618_vm0, %v2918_v44 }
  0x7c   : > { %2443 = vmatmul.msk.f32.gmra.mxu0 %vm618_vm0, %v2925_v45  ;;  %2460 = vmatmul.msk.f32.gmra.mxu1 %vm618_vm0, %v2928_v46 }
  0x84   : > { %2444 = vmatmul.msk.f32.gmra.mxu0 %vm618_vm0, %v2935_v47  ;;  %2461 = vmatmul.msk.f32.gmra.mxu1 %vm618_vm0, %v2938_v48 }
  0x8c   : > { %2445 = vmatmul.msk.f32.gmra.mxu0 %vm618_vm0, %v2945_v49 }
  0x91   : > { %v732_v51 = vpop.f32.mrf.mxu0  ;;  %v2957_v53 = vpop.f32.mrf.mxu1 }
  0x92   : > { %v733_v54 = vadd.f32 %v2952_v50, %v732_v51 }
  0x94   : > { %v828_v55 = vmax.f32 %v733_v54, 0.0  ;;  %2446 = vmatmul.msk.f32.gmra.mxu0 %vm618_vm0, %v2955_v52 }
  0x96   : > { %896 = vmatmul.f32.vlgmr.msrb.gmra.mxu1 %v828_v55 }
  0x99   : > { %v735_v56 = vpop.f32.mrf.mxu0  ;;  %v2962_v57 = vpop.f32.mrf.mxu1 }
  0x9a   : > { %v736_v58 = vadd.f32 %v2952_v50, %v735_v56 }
  0x9c   : > { %v829_v59 = vmax.f32 %v736_v58, 0.0 }
  0x9e   : > { %899 = vmatmul.f32.gmra.mxu1 %v829_v59  ;;  %v1043_v59 = vld [vmem:[%s4241_s6 + $0x78] sm:$0xff] }
  0x9f   : > { %1045 = vmatpush.msra.mxu2 %v1043_v59  ;;  %v1033_v59 = vld [vmem:[%s4241_s6 + $0x28] sm:$0xff] }
  0xa1   : > { %v738_v60 = vpop.f32.mrf.mxu0  ;;  %v2965_v61 = vpop.f32.mrf.mxu1 }
  0xa2   : > { %v739_v62 = vadd.f32 %v2952_v50, %v738_v60 }
  0xa4   : > { %v830_v63 = vmax.f32 %v739_v62, 0.0 }
  0xa6   : > { %902 = vmatmul.f32.gmra.mxu1 %v830_v63 }
  0xa9   : > { %v741_v0 = vpop.f32.mrf.mxu0  ;;  %v2968_v1 = vpop.f32.mrf.mxu1 }
  0xaa   : > { %v742_v2 = vadd.f32 %v2952_v50, %v741_v0  ;;  %v1042_v0 = vld [vmem:[%s4241_s6 + $0x70] sm:$0xff] }
  0xab   : > { %1046 = vmatpush.msra.mxu2 %v1042_v0 }
  0xac   : > { %v831_v3 = vmax.f32 %v742_v2, 0.0 }
  0xae   : > { %905 = vmatmul.f32.gmra.mxu1 %v831_v3  ;;  %v1041_v3 = vld [vmem:[%s4241_s6 + $0x68] sm:$0xff] }
  0xaf   : > { %1047 = vmatpush.msra.mxu2 %v1041_v3  ;;  %v1030_v3 = vld [vmem:[%s4241_s6 + $0x10] sm:$0xff] }
  0xb1   : > { %v744_v4 = vpop.f32.mrf.mxu0  ;;  %v2971_v7 = vpop.f32.mrf.mxu1 }
  0xb2   : > { %v745_v8 = vadd.f32 %v2952_v50, %v744_v4  ;;  %v1040_v4 = vld [vmem:[%s4241_s6 + $0x60] sm:$0xff] }
  0xb3   : > { %1048 = vmatpush.msra.mxu2 %v1040_v4 }
  0xb4   : > { %v832_v11 = vmax.f32 %v745_v8, 0.0  ;;  %v1039_v8 = vld [vmem:[%s4241_s6 + $0x58] sm:$0xff] }
  0xb5   : > { %1049 = vmatpush.msra.mxu2 %v1039_v8  ;;  %v1029_v8 = vld [vmem:[%s4241_s6 + $0x8] sm:$0xff] }
  0xb6   : > { %908 = vmatmul.f32.gmra.mxu1 %v832_v11 }
  0xb9   : > { %v747_v14 = vpop.f32.mrf.mxu0  ;;  %v2974_v15 = vpop.f32.mrf.mxu1 }
  0xba   : > { %v748_v18 = vadd.f32 %v2952_v50, %v747_v14 }
  0xbc   : > { %v833_v21 = vmax.f32 %v748_v18, 0.0 }
  0xbe   : > { %911 = vmatmul.f32.gmra.mxu1 %v833_v21  ;;  %v1038_v21 = vld [vmem:[%s4241_s6 + $0x50] sm:$0xff] }
  0xbf   : > { %1050 = vmatpush.msra.mxu2 %v1038_v21  ;;  %v1027_v21 = vld [vmem:[%s4240_s5 + $0x10] sm:$0xff] }
  0xc0   : > { %2563 = vmatpush.msra.mxu3 %v1027_v21 }
  0xc1   : > { %v750_v24 = vpop.f32.mrf.mxu0  ;;  %v2977_v27 = vpop.f32.mrf.mxu1 }
  0xc2   : > { %v751_v30 = vadd.f32 %v2952_v50, %v750_v24 }
  0xc4   : > { %v834_v33 = vmax.f32 %v751_v30, 0.0  ;;  %v1037_v30 = vld [vmem:[%s4241_s6 + $0x48] sm:$0xff] }
  0xc5   : > { %1051 = vmatpush.msra.mxu2 %v1037_v30 }
  0xc6   : > { %914 = vmatmul.f32.gmra.mxu1 %v834_v33  ;;  %v1036_v33 = vld [vmem:[%s4241_s6 + $0x40] sm:$0xff] }
  0xc7   : > { %1052 = vmatpush.msra.mxu2 %v1036_v33 }
  0xc9   : > { %v753_v36 = vpop.f32.mrf.mxu0  ;;  %v2980_v39 = vpop.f32.mrf.mxu1 }
  0xca   : > { %v754_v42 = vadd.f32 %v2952_v50, %v753_v36  ;;  %v1035_v36 = vld [vmem:[%s4241_s6 + $0x38] sm:$0xff] }
  0xcb   : > { %1053 = vmatpush.msra.mxu2 %v1035_v36 }
  0xcc   : > { %v835_v51 = vmax.f32 %v754_v42, 0.0 }
  0xce   : > { %917 = vmatmul.f32.gmra.mxu1 %v835_v51 }
  0xd1   : > { %v756_v54 = vpop.f32.mrf.mxu0  ;;  %v2983_v55 = vpop.f32.mrf.mxu1 }
  0xd2   : > { %v757_v56 = vadd.f32 %v2952_v50, %v756_v54  ;;  %v1034_v54 = vld [vmem:[%s4241_s6 + $0x30] sm:$0xff] }
  0xd3   : > { %1054 = vmatpush.msra.mxu2 %v1034_v54 }
  0xd4   : > { %v836_v58 = vmax.f32 %v757_v56, 0.0 }
  0xd5   : > { %1055 = vmatpush.msra.mxu2 %v1033_v59 }
  0xd6   : > { %920 = vmatmul.f32.gmra.mxu1 %v836_v58 }
  0xd9   : > { %v759_v60 = vpop.f32.mrf.mxu0  ;;  %v2989_v62 = vpop.f32.mrf.mxu1 }
  0xda   : > { %v760_v63 = vadd.f32 %v2952_v50, %v759_v60  ;;  %v1032_v60 = vld [vmem:[%s4241_s6 + $0x20] sm:$0xff] }
  0xdb   : > { %1056 = vmatpush.msra.mxu2 %v1032_v60 }
  0xdc   : > { %v837_v2 = vmax.f32 %v760_v63, 0.0  ;;  %v1031_v63 = vld [vmem:[%s4241_s6 + $0x18] sm:$0xff] }
  0xdd   : > { %1057 = vmatpush.msra.mxu2 %v1031_v63 }
  0xde   : > { %923 = vmatmul.f32.gmra.mxu1 %v837_v2 }
  0xdf   : > { %1058 = vmatpush.msra.mxu2 %v1030_v3 }
  0xe1   : > { %v762_v11 = vpop.f32.mrf.mxu0  ;;  %v3004_v14 = vpop.f32.mrf.mxu1  ;;  %1059 = vmatpush.msra.mxu2 %v1029_v8 }
  0xe2   : > { %v763_v18 = vadd.f32 %v2952_v50, %v762_v11 }
  0xe4   : > { %v838_v24 = vmax.f32 %v763_v18, 0.0  ;;  %v1028_v18 = vld [vmem:[%s4241_s6] sm:$0xff] }
  0xe5   : > { %1060 = vmatpush.msra.mxu2 %v1028_v18 }
  0xe6   : > { %926 = vmatmul.f32.gmra.mxu1 %v838_v24 }
  0xe7   : > { %1171 = vmatpush.msrb.mxu2 %v1027_v21 }
  0xe9   : > { %v765_v42 = vpop.f32.mrf.mxu0  ;;  %v3023_v56 = vpop.f32.mrf.mxu1 }
  0xea   : > { %v766_v51 = vadd.f32 %v2952_v50, %v765_v42 }
  0xec   : > { %v839_v58 = vmax.f32 %v766_v51, 0.0 }
  0xee   : > { %929 = vmatmul.f32.gmra.mxu1 %v839_v58 }
  0xf1   : > { %v768_v0 = vpop.f32.mrf.mxu0  ;;  %v3041_v11 = vpop.f32.mrf.mxu1 }
  0xf2   : > { %v769_v2 = vadd.f32 %v2952_v50, %v768_v0  ;;  %v3059_v0 = vld [vmem:[%s4239_s4] ss:$0 sm:$0xff] }
  0xf4   : > { %v840_v4 = vmax.f32 %v769_v2, 0.0 }
  0xf6   : > { %932 = vmatmul.f32.gmra.mxu1 %v840_v4 }
  0xf9   : > { %v771_v24 = vpop.f32.mrf.mxu0  ;;  %v3050_v36 = vpop.f32.mrf.mxu1 }
  0xfa   : > { %v772_v30 = vadd.f32 %v2952_v50, %v771_v24  ;;  %v784_v24 = vadd.f32 %v2952_v50, %v2957_v53  ;;  %v790_v53 = vadd.f32 %v2952_v50, %v2965_v61  ;;  %v796_v61 = vadd.f32 %v2952_v50, %v2971_v7 }
  0xfb   : > { %v802_v7 = vadd.f32 %v2952_v50, %v2977_v27 }
  0xfc   : > { %v841_v33 = vmax.f32 %v772_v30, 0.0 }
  0xfe   : > { %935 = vmatmul.f32.gmra.mxu1 %v841_v33  ;;  %v845_v33 = vmax.f32 %v784_v24, 0.0 }
 0x101   : > { %v774_v42 = vpop.f32.mrf.mxu0  ;;  %v3053_v59 = vpop.f32.mrf.mxu1 }
 0x102   : > { %v775_v51 = vadd.f32 %v2952_v50, %v774_v42 }
 0x104   : > { %v842_v54 = vmax.f32 %v775_v51, 0.0 }
 0x106   : > { %938 = vmatmul.f32.gmra.mxu1 %v842_v54  ;;  %v787_v54 = vadd.f32 %v2952_v50, %v2962_v57  ;;  %v793_v57 = vadd.f32 %v2952_v50, %v2968_v1  ;;  %v799_v1 = vadd.f32 %v2952_v50, %v2974_v15  ;;  %v1026_v15 = vld [vmem:[%s4240_s5 + $0x8] sm:$0xff] }
 0x107   : > { %1172 = vmatpush.msrb.mxu2 %v1026_v15  ;;  %2564 = vmatpush.msra.mxu3 %v1026_v15 }
 0x108   : > { %v848_v24 = vmax.f32 %v793_v57, 0.0  ;;  %v805_v57 = vadd.f32 %v2952_v50, %v2980_v39  ;;  %v811_v39 = vadd.f32 %v2952_v50, %v2989_v62  ;;  %v1025_v62 = vld [vmem:[%s4240_s5] sm:$0xff] }
 0x109   : > { %v777_v58 = vpop.f32.mrf.mxu0  ;;  %2565 = vmatpush.msra.mxu3 %v1025_v62  ;;  %1173 = vmatpush.msrb.mxu2 %v1025_v62 }
 0x10a   : > { %v778_v60 = vadd.f32 %v2952_v50, %v777_v58  ;;  %2477 = vmatmul.msk.f32.vlgmr.msra.gmra.mxu3 %vm618_vm0, %v2945_v49  ;;  %v823_v49 = vadd.f32 %v2952_v50, %v3050_v36 }
 0x10c   : > { %v843_v63 = vmax.f32 %v778_v60, 0.0  ;;  %v846_v60 = vmax.f32 %v787_v54, 0.0 }
 0x10e   : > { %941 = vmatmul.f32.gmra.mxu1 %v843_v63 }
 0x111   : > { %v780_v2 = vpop.f32.mrf.mxu0 }
 0x112   : > { %v781_v3 = vadd.f32 %v2952_v50, %v780_v2  ;;  %2478 = vmatmul.msk.f32.gmra.mxu3 %vm618_vm0, %v2955_v52  ;;  %v826_v52 = vadd.f32 %v2952_v50, %v3053_v59 }
 0x113   : > { %v897_v4 = vpop.f32.mrf.mxu1 }
 0x114   : > { %v844_v8 = vmax.f32 %v781_v3, 0.0  ;;  %v898_v18 = vadd.f32 %v3059_v0, %v897_v4  ;;  %v847_v4 = vmax.f32 %v790_v53, 0.0 }
 0x116   : > { %944 = vmatmul.f32.gmra.mxu1 %v844_v8  ;;  %v993_v21 = vmax.f32 %v898_v18, 0.0 }
 0x118   : > { %1061 = vmatmul.f32.vlgmr.msra.gmra.mxu2 %v993_v21 }
 0x11a   : > { %2479 = vmatmul.msk.f32.gmra.mxu3 %vm618_vm0, %v2756_v6 }
 0x11b   : > { %v900_v30 = vpop.f32.mrf.mxu1 }
 0x11c   : > { %v901_v42 = vadd.f32 %v3059_v0, %v900_v30 }
 0x11e   : > { %947 = vmatmul.f32.gmra.mxu1 %v845_v33  ;;  %v994_v51 = vmax.f32 %v901_v42, 0.0 }
 0x120   : > { %1064 = vmatmul.f32.gmra.mxu2 %v994_v51  ;;  %v849_v51 = vmax.f32 %v796_v61, 0.0 }
 0x122   : > { %2480 = vmatmul.msk.f32.gmra.mxu3 %vm618_vm0, %v2772_v10 }
 0x123   : > { %v903_v58 = vpop.f32.mrf.mxu1 }
 0x124   : > { %v904_v63 = vadd.f32 %v3059_v0, %v903_v58 }
 0x126   : > { %950 = vmatmul.f32.gmra.mxu1 %v846_v60  ;;  %v995_v2 = vmax.f32 %v904_v63, 0.0  ;;  %v850_v63 = vmax.f32 %v799_v1, 0.0  ;;  %v854_v1 = vmax.f32 %v811_v39, 0.0 }
 0x128   : > { %1067 = vmatmul.f32.gmra.mxu2 %v995_v2 }
 0x12a   : > { %2481 = vmatmul.msk.f32.gmra.mxu3 %vm618_vm0, %v2785_v13 }
 0x12b   : > { %v906_v3 = vpop.f32.mrf.mxu1 }
 0x12c   : > { %v907_v8 = vadd.f32 %v3059_v0, %v906_v3 }
 0x12e   : > { %953 = vmatmul.f32.gmra.mxu1 %v847_v4  ;;  %v996_v18 = vmax.f32 %v907_v8, 0.0  ;;  %v851_v4 = vmax.f32 %v802_v7, 0.0 }
 0x130   : > { %1070 = vmatmul.f32.gmra.mxu2 %v996_v18 }
 0x132   : > { %2482 = vmatmul.msk.f32.gmra.mxu3 %vm618_vm0, %v2801_v17 }
 0x133   : > { %v909_v21 = vpop.f32.mrf.mxu1 }
 0x134   : > { %v910_v30 = vadd.f32 %v3059_v0, %v909_v21 }
 0x136   : > { %956 = vmatmul.f32.gmra.mxu1 %v848_v24  ;;  %v997_v33 = vmax.f32 %v910_v30, 0.0  ;;  %v852_v24 = vmax.f32 %v805_v57, 0.0  ;;  %v820_v57 = vadd.f32 %v2952_v50, %v3041_v11 }
 0x138   : > { %1073 = vmatmul.f32.gmra.mxu2 %v997_v33  ;;  %v808_v33 = vadd.f32 %v2952_v50, %v2983_v55  ;;  %v814_v55 = vadd.f32 %v2952_v50, %v3004_v14 }
 0x13a   : > { %2483 = vmatmul.msk.f32.gmra.mxu3 %vm618_vm0, %v2814_v20 }
 0x13b   : > { %v912_v42 = vpop.f32.mrf.mxu1 }
 0x13c   : > { %v913_v54 = vadd.f32 %v3059_v0, %v912_v42  ;;  %v853_v42 = vmax.f32 %v808_v33, 0.0  ;;  %v858_v33 = vmax.f32 %v823_v49, 0.0 }
 0x13e   : > { %959 = vmatmul.f32.gmra.mxu1 %v849_v51  ;;  %v998_v58 = vmax.f32 %v913_v54, 0.0 }
 0x140   : > { %1076 = vmatmul.f32.gmra.mxu2 %v998_v58 }
 0x142   : > { %2484 = vmatmul.msk.f32.gmra.mxu3 %vm618_vm0, %v2827_v23 }
 0x143   : > { %v915_v60 = vpop.f32.mrf.mxu1 }
 0x144   : > { %v916_v2 = vadd.f32 %v3059_v0, %v915_v60 }
 0x146   : > { %962 = vmatmul.f32.gmra.mxu1 %v850_v63  ;;  %v999_v53 = vmax.f32 %v916_v2, 0.0 }
 0x148   : > { %1079 = vmatmul.f32.gmra.mxu2 %v999_v53  ;;  %v855_v53 = vmax.f32 %v814_v55, 0.0 }
 0x14a   : > { %2485 = vmatmul.msk.f32.gmra.mxu3 %vm618_vm0, %v2840_v26 }
 0x14b   : > { %v918_v3 = vpop.f32.mrf.mxu1 }
 0x14c   : > { %v919_v8 = vadd.f32 %v3059_v0, %v918_v3 }
 0x14e   : > { %965 = vmatmul.f32.gmra.mxu1 %v851_v4  ;;  %v1000_v18 = vmax.f32 %v919_v8, 0.0  ;;  %v817_v4 = vadd.f32 %v2952_v50, %v3023_v56 }
 0x150   : > { %1082 = vmatmul.f32.gmra.mxu2 %v1000_v18  ;;  %v856_v8 = vmax.f32 %v817_v4, 0.0 }
 0x152   : > { %2486 = vmatmul.msk.f32.gmra.mxu3 %vm618_vm0, %v2853_v29 }
 0x153   : > { %v921_v21 = vpop.f32.mrf.mxu1 }
 0x154   : > { %v922_v27 = vadd.f32 %v3059_v0, %v921_v21 }
 0x156   : > { %968 = vmatmul.f32.gmra.mxu1 %v852_v24  ;;  %v1001_v30 = vmax.f32 %v922_v27, 0.0  ;;  %v857_v24 = vmax.f32 %v820_v57, 0.0 }
 0x158   : > { %1085 = vmatmul.f32.gmra.mxu2 %v1001_v30 }
 0x15a   : > { %2487 = vmatmul.msk.f32.gmra.mxu3 %vm618_vm0, %v2866_v32 }
 0x15b   : > { %v924_v61 = vpop.f32.mrf.mxu1 }
 0x15c   : > { %v925_v51 = vadd.f32 %v3059_v0, %v924_v61 }
 0x15e   : > { %971 = vmatmul.f32.gmra.mxu1 %v853_v42  ;;  %v1002_v54 = vmax.f32 %v925_v51, 0.0  ;;  %v859_v51 = vmax.f32 %v826_v52, 0.0 }
 0x160   : > { %1088 = vmatmul.f32.gmra.mxu2 %v1002_v54 }
 0x162   : > { %2488 = vmatmul.msk.f32.gmra.mxu3 %vm618_vm0, %v2879_v35 }
 0x163   : > { %v927_v58 = vpop.f32.mrf.mxu1 }
 0x164   : > { %v928_v60 = vadd.f32 %v3059_v0, %v927_v58 }
 0x166   : > { %974 = vmatmul.f32.gmra.mxu1 %v854_v1  ;;  %v1003_v63 = vmax.f32 %v928_v60, 0.0 }
 0x168   : > { %1091 = vmatmul.f32.gmra.mxu2 %v1003_v63 }
 0x16a   : > { %2489 = vmatmul.msk.f32.gmra.mxu3 %vm618_vm0, %v2892_v38 }
 0x16b   : > { %v930_v2 = vpop.f32.mrf.mxu1 }
 0x16c   : > { %v931_v7 = vadd.f32 %v3059_v0, %v930_v2 }
 0x16e   : > { %977 = vmatmul.f32.gmra.mxu1 %v855_v53  ;;  %v1004_v3 = vmax.f32 %v931_v7, 0.0 }
 0x170   : > { %1094 = vmatmul.f32.gmra.mxu2 %v1004_v3 }
 0x172   : > { %2490 = vmatmul.msk.f32.gmra.mxu3 %vm618_vm0, %v2905_v41 }
 0x173   : > { %v933_v14 = vpop.f32.mrf.mxu1 }
 0x174   : > { %v934_v18 = vadd.f32 %v3059_v0, %v933_v14 }
 0x176   : > { %980 = vmatmul.f32.gmra.mxu1 %v856_v8  ;;  %v1005_v15 = vmax.f32 %v934_v18, 0.0 }
 0x178   : > { %1097 = vmatmul.f32.gmra.mxu2 %v1005_v15 }
 0x17a   : > { %2491 = vmatmul.msk.f32.gmra.mxu3 %vm618_vm0, %v2918_v44 }
 0x17b   : > { %v936_v21 = vpop.f32.mrf.mxu1 }
 0x17c   : > { %v937_v56 = vadd.f32 %v3059_v0, %v936_v21 }
 0x17e   : > { %983 = vmatmul.f32.gmra.mxu1 %v857_v24  ;;  %v1006_v27 = vmax.f32 %v937_v56, 0.0 }
 0x180   : > { %1100 = vmatmul.f32.gmra.mxu2 %v1006_v27 }
 0x182   : > { %2492 = vmatmul.msk.f32.gmra.mxu3 %vm618_vm0, %v2928_v46  ;;  %v1353_v46 = vld [vmem:[%s4243_s8 + $0x78] sm:$0xff] }
 0x183   : > { %v939_v30 = vpop.f32.mrf.mxu1  ;;  %1358 = vmatpush.msrb.mxu0 %v1353_v46  ;;  %v3327_v46 = vld [vmem:[%s4242_s7] ss:$0 sm:$0xff] }
 0x184   : > { %v940_v11 = vadd.f32 %v3059_v0, %v939_v30 }
 0x186   : > { %986 = vmatmul.f32.gmra.mxu1 %v858_v33  ;;  %v1007_v61 = vmax.f32 %v940_v11, 0.0 }
 0x188   : > { %1103 = vmatmul.f32.gmra.mxu2 %v1007_v61 }
 0x18a   : > { %2493 = vmatmul.msk.f32.gmra.mxu3 %vm618_vm0, %v2938_v48 }
 0x18b   : > { %v942_v42 = vpop.f32.mrf.mxu1 }
 0x18c   : > { %v943_v36 = vadd.f32 %v3059_v0, %v942_v42 }
 0x18e   : > { %989 = vmatmul.f32.gmra.mxu1 %v859_v51  ;;  %v1008_v54 = vmax.f32 %v943_v36, 0.0 }
 0x190   : > { %1106 = vmatmul.f32.gmra.mxu2 %v1008_v54 }
 0x193   : > { %v945_v6 = vpop.f32.mrf.mxu1 }
 0x194   : > { %v946_v39 = vadd.f32 %v3059_v0, %v945_v6 }
 0x196   : > { %v1009_v58 = vmax.f32 %v946_v39, 0.0 }
 0x198   : > { %1109 = vmatmul.f32.gmra.mxu2 %v1009_v58 }
 0x19b   : > { %v948_v50 = vpop.f32.mrf.mxu1  ;;  %v3127_v10 = vpop.f32.mrf.mxu2 }
 0x19c   : > { %v949_v59 = vadd.f32 %v3059_v0, %v948_v50 }
 0x19e   : > { %v1010_v1 = vmax.f32 %v949_v59, 0.0 }
 0x1a0   : > { %1112 = vmatmul.f32.gmra.mxu2 %v1010_v1 }
 0x1a3   : > { %v951_v60 = vpop.f32.mrf.mxu1  ;;  %v3132_v13 = vpop.f32.mrf.mxu2 }
 0x1a4   : > { %v952_v63 = vadd.f32 %v3059_v0, %v951_v60 }
 0x1a6   : > { %v1011_v55 = vmax.f32 %v952_v63, 0.0 }
 0x1a8   : > { %1115 = vmatmul.f32.gmra.mxu2 %v1011_v55 }
 0x1ab   : > { %v954_v17 = vpop.f32.mrf.mxu1  ;;  %v3137_v2 = vpop.f32.mrf.mxu2 }
 0x1ac   : > { %v955_v53 = vadd.f32 %v3059_v0, %v954_v17 }
 0x1ae   : > { %v1012_v7 = vmax.f32 %v955_v53, 0.0 }
 0x1b0   : > { %1118 = vmatmul.f32.gmra.mxu2 %v1012_v7 }
 0x1b3   : > { %v957_v20 = vpop.f32.mrf.mxu1  ;;  %v3142_v3 = vpop.f32.mrf.mxu2 }
 0x1b4   : > { %v958_v62 = vadd.f32 %v3059_v0, %v957_v20  ;;  %v1352_v20 = vld [vmem:[%s4243_s8 + $0x70] sm:$0xff] }
 0x1b5   : > { %1359 = vmatpush.msrb.mxu0 %v1352_v20  ;;  %v1513_v20 = vld [vmem:[%s4245_s10 + $0x50] sm:$0xff] }
 0x1b6   : > { %v1013_v4 = vmax.f32 %v958_v62, 0.0 }
 0x1b8   : > { %1121 = vmatmul.f32.gmra.mxu2 %v1013_v4 }
 0x1bb   : > { %v960_v23 = vpop.f32.mrf.mxu1  ;;  %v3147_v14 = vpop.f32.mrf.mxu2 }
 0x1bc   : > { %v961_v8 = vadd.f32 %v3059_v0, %v960_v23 }
 0x1be   : > { %v1014_v18 = vmax.f32 %v961_v8, 0.0 }
 0x1c0   : > { %1124 = vmatmul.f32.gmra.mxu2 %v1014_v18  ;;  %v1351_v18 = vld [vmem:[%s4243_s8 + $0x68] sm:$0xff] }
 0x1c1   : > { %1360 = vmatpush.msrb.mxu0 %v1351_v18 }
 0x1c3   : > { %v963_v26 = vpop.f32.mrf.mxu1  ;;  %v3152_v15 = vpop.f32.mrf.mxu2 }
 0x1c4   : > { %v964_v57 = vadd.f32 %v3059_v0, %v963_v26 }
 0x1c6   : > { %v1015_v21 = vmax.f32 %v964_v57, 0.0  ;;  %v1350_v57 = vld [vmem:[%s4243_s8 + $0x60] sm:$0xff] }
 0x1c7   : > { %1361 = vmatpush.msrb.mxu0 %v1350_v57 }
 0x1c8   : > { %1127 = vmatmul.f32.gmra.mxu2 %v1015_v21 }
 0x1cb   : > { %v966_v29 = vpop.f32.mrf.mxu1  ;;  %v3157_v24 = vpop.f32.mrf.mxu2 }
 0x1cc   : > { %v967_v56 = vadd.f32 %v3059_v0, %v966_v29 }
 0x1ce   : > { %v1016_v27 = vmax.f32 %v967_v56, 0.0  ;;  %v1348_v56 = vld [vmem:[%s4243_s8 + $0x50] sm:$0xff] }
 0x1d0   : > { %1130 = vmatmul.f32.gmra.mxu2 %v1016_v27  ;;  %v1347_v27 = vld [vmem:[%s4243_s8 + $0x48] sm:$0xff] }
 0x1d3   : > { %v969_v32 = vpop.f32.mrf.mxu1  ;;  %v3162_v49 = vpop.f32.mrf.mxu2 }
 0x1d4   : > { %v970_v30 = vadd.f32 %v3059_v0, %v969_v32  ;;  %v1346_v32 = vld [vmem:[%s4243_s8 + $0x40] sm:$0xff] }
 0x1d6   : > { %v1017_v33 = vmax.f32 %v970_v30, 0.0  ;;  %v1345_v30 = vld [vmem:[%s4243_s8 + $0x38] sm:$0xff] }
 0x1d8   : > { %1133 = vmatmul.f32.gmra.mxu2 %v1017_v33  ;;  %v1344_v33 = vld [vmem:[%s4243_s8 + $0x30] sm:$0xff] }
 0x1db   : > { %v972_v35 = vpop.f32.mrf.mxu1  ;;  %v3167_v11 = vpop.f32.mrf.mxu2 }
 0x1dc   : > { %v973_v61 = vadd.f32 %v3059_v0, %v972_v35  ;;  %v1343_v35 = vld [vmem:[%s4243_s8 + $0x28] sm:$0xff] }
 0x1de   : > { %v1018_v52 = vmax.f32 %v973_v61, 0.0  ;;  %v1342_v61 = vld [vmem:[%s4243_s8 + $0x20] sm:$0xff] }
 0x1e0   : > { %1136 = vmatmul.f32.gmra.mxu2 %v1018_v52  ;;  %v1341_v52 = vld [vmem:[%s4243_s8 + $0x18] sm:$0xff] }
 0x1e3   : > { %v975_v38 = vpop.f32.mrf.mxu1  ;;  %v3172_v42 = vpop.f32.mrf.mxu2 }
 0x1e4   : > { %v976_v51 = vadd.f32 %v3059_v0, %v975_v38 }
 0x1e6   : > { %v1019_v36 = vmax.f32 %v976_v51, 0.0 }
 0x1e8   : > { %1139 = vmatmul.f32.gmra.mxu2 %v1019_v36 }
 0x1eb   : > { %v978_v41 = vpop.f32.mrf.mxu1  ;;  %v3177_v54 = vpop.f32.mrf.mxu2 }
 0x1ec   : > { %v979_v6 = vadd.f32 %v3059_v0, %v978_v41  ;;  %v1518_v41 = vld [vmem:[%s4245_s10 + $0x78] sm:$0xff] }
 0x1ed   : > { %1523 = vmatpush.msrb.mxu3 %v1518_v41 }
 0x1ee   : > { %v1020_v39 = vmax.f32 %v979_v6, 0.0  ;;  %v1517_v6 = vld [vmem:[%s4245_s10 + $0x70] sm:$0xff] }
 0x1ef   : > { %1524 = vmatpush.msrb.mxu3 %v1517_v6  ;;  %v1509_v6 = vld [vmem:[%s4245_s10 + $0x30] sm:$0xff] }
 0x1f0   : > { %1142 = vmatmul.f32.gmra.mxu2 %v1020_v39 }
 0x1f3   : > { %v981_v44 = vpop.f32.mrf.mxu1  ;;  %v3182_v58 = vpop.f32.mrf.mxu2 }
 0x1f4   : > { %v982_v50 = vadd.f32 %v3059_v0, %v981_v44 }
 0x1f6   : > { %v1021_v59 = vmax.f32 %v982_v50, 0.0  ;;  %v1515_v50 = vld [vmem:[%s4245_s10 + $0x60] sm:$0xff] }
 0x1f8   : > { %1145 = vmatmul.f32.gmra.mxu2 %v1021_v59 }
 0x1fb   : > { %v984_v1 = vpop.f32.mrf.mxu1  ;;  %v3188_v60 = vpop.f32.mrf.mxu2 }
 0x1fc   : > { %v985_v63 = vadd.f32 %v3059_v0, %v984_v1 }
 0x1fe   : > { %v1022_v55 = vmax.f32 %v985_v63, 0.0  ;;  %v1514_v63 = vld [vmem:[%s4245_s10 + $0x58] sm:$0xff] }
 0x200   : > { %1148 = vmatmul.f32.gmra.mxu2 %v1022_v55 }
 0x203   : > { %v987_v48 = vpop.f32.mrf.mxu1  ;;  %v3191_v17 = vpop.f32.mrf.mxu2 }
 0x204   : > { %v988_v53 = vadd.f32 %v3059_v0, %v987_v48 }
 0x206   : > { %v1023_v7 = vmax.f32 %v988_v53, 0.0 }
 0x208   : > { %1151 = vmatmul.f32.gmra.mxu2 %v1023_v7 }
 0x20b   : > { %v990_v62 = vpop.f32.mrf.mxu1  ;;  %v3197_v4 = vpop.f32.mrf.mxu2 }
 0x20c   : > { %v991_v23 = vadd.f32 %v3059_v0, %v990_v62  ;;  %v1349_v0 = vld [vmem:[%s4243_s8 + $0x58] sm:$0xff] }
 0x20d   : > { %1362 = vmatpush.msrb.mxu0 %v1349_v0 }
 0x20e   : > { %v1024_v8 = vmax.f32 %v991_v23, 0.0  ;;  %v1652_v23 = vld [vmem:[%s4248_s13 + $0x68] sm:$0xff] }
 0x20f   : > { %1363 = vmatpush.msrb.mxu0 %v1348_v56 }
 0x210   : > { %1154 = vmatmul.f32.gmra.mxu2 %v1024_v8 }
 0x211   : > { %1364 = vmatpush.msrb.mxu0 %v1347_v27 }
 0x213   : > { %v3203_v26 = vpop.f32.mrf.mxu2  ;;  %1365 = vmatpush.msrb.mxu0 %v1346_v32 }
 0x215   : > { %1366 = vmatpush.msrb.mxu0 %v1345_v30  ;;  %v1511_v30 = vld [vmem:[%s4245_s10 + $0x40] sm:$0xff] }
 0x217   : > { %1367 = vmatpush.msrb.mxu0 %v1344_v33  ;;  %v1651_v33 = vld [vmem:[%s4248_s13 + $0x60] sm:$0xff] }
 0x218   : > { %2462 = vmatmul.msk.f32.vlgmr.msrb.gmra.mxu2 %vm618_vm0, %v2753_v5 }
 0x219   : > { %1368 = vmatpush.msrb.mxu0 %v1343_v35 }
 0x21b   : > { %v3210_v21 = vpop.f32.mrf.mxu2  ;;  %1369 = vmatpush.msrb.mxu0 %v1342_v61 }
 0x21d   : > { %1370 = vmatpush.msrb.mxu0 %v1341_v52 }
 0x220   : > { %2463 = vmatmul.msk.f32.gmra.mxu2 %vm618_vm0, %v2769_v9 }
 0x223   : > { %v3217_v29 = vpop.f32.mrf.mxu2 }
 0x228   : > { %2464 = vmatmul.msk.f32.gmra.mxu2 %vm618_vm0, %v2782_v12 }
 0x22b   : > { %v3224_v5 = vpop.f32.mrf.mxu2 }
 0x230   : > { %2465 = vmatmul.msk.f32.gmra.mxu2 %vm618_vm0, %v2798_v16 }
 0x233   : > { %v3231_v9 = vpop.f32.mrf.mxu2 }
 0x238   : > { %2466 = vmatmul.msk.f32.gmra.mxu2 %vm618_vm0, %v2811_v19 }
 0x23b   : > { %v3238_v12 = vpop.f32.mrf.mxu2 }
 0x240   : > { %2467 = vmatmul.msk.f32.gmra.mxu2 %vm618_vm0, %v2824_v22 }
 0x243   : > { %v3245_v16 = vpop.f32.mrf.mxu2 }
 0x248   : > { %2468 = vmatmul.msk.f32.gmra.mxu2 %vm618_vm0, %v2837_v25 }
 0x24b   : > { %v3252_v19 = vpop.f32.mrf.mxu2 }
 0x250   : > { %2469 = vmatmul.msk.f32.gmra.mxu2 %vm618_vm0, %v2850_v28 }
 0x253   : > { %v3259_v22 = vpop.f32.mrf.mxu2 }
 0x258   : > { %2470 = vmatmul.msk.f32.gmra.mxu2 %vm618_vm0, %v2863_v31  ;;  %v1340_v31 = vld [vmem:[%s4243_s8 + $0x10] sm:$0xff] }
 0x259   : > { %1371 = vmatpush.msrb.mxu0 %v1340_v31 }
 0x25b   : > { %v3266_v25 = vpop.f32.mrf.mxu2 }
 0x260   : > { %2471 = vmatmul.msk.f32.gmra.mxu2 %vm618_vm0, %v2876_v34  ;;  %v1339_v34 = vld [vmem:[%s4243_s8 + $0x8] sm:$0xff] }
 0x261   : > { %1372 = vmatpush.msrb.mxu0 %v1339_v34 }
 0x263   : > { %v3273_v28 = vpop.f32.mrf.mxu2 }
 0x268   : > { %2472 = vmatmul.msk.f32.gmra.mxu2 %vm618_vm0, %v2889_v37  ;;  %v1338_v37 = vld [vmem:[%s4243_s8] sm:$0xff] }
 0x269   : > { %1373 = vmatpush.msrb.mxu0 %v1338_v37 }
 0x26b   : > { %v3280_v38 = vpop.f32.mrf.mxu2 }
 0x270   : > { %2473 = vmatmul.msk.f32.gmra.mxu2 %vm618_vm0, %v2902_v40 }
 0x273   : > { %v3287_v51 = vpop.f32.mrf.mxu2 }
 0x278   : > { %2474 = vmatmul.msk.f32.gmra.mxu2 %vm618_vm0, %v2915_v43  ;;  %v1654_v43 = vld [vmem:[%s4248_s13 + $0x78] sm:$0xff] }
 0x279   : > { %1656 = vmatpush.msra.mxu1 %v1654_v43  ;;  %v1650_v43 = vld [vmem:[%s4248_s13 + $0x58] sm:$0xff] }
 0x27b   : > { %v3294_v36 = vpop.f32.mrf.mxu2 }
 0x280   : > { %2475 = vmatmul.msk.f32.gmra.mxu2 %vm618_vm0, %v2925_v45  ;;  %v1516_v45 = vld [vmem:[%s4245_s10 + $0x68] sm:$0xff] }
 0x281   : > { %1525 = vmatpush.msrb.mxu3 %v1516_v45 }
 0x283   : > { %v3301_v40 = vpop.f32.mrf.mxu2  ;;  %1526 = vmatpush.msrb.mxu3 %v1515_v50 }
 0x285   : > { %1527 = vmatpush.msrb.mxu3 %v1514_v63 }
 0x287   : > { %1528 = vmatpush.msrb.mxu3 %v1513_v20 }
 0x288   : > { %2476 = vmatmul.msk.f32.gmra.mxu2 %vm618_vm0, %v2935_v47  ;;  %v1653_v47 = vld [vmem:[%s4248_s13 + $0x70] sm:$0xff] }
 0x289   : > { %1657 = vmatpush.msra.mxu1 %v1653_v47 }
 0x28b   : > { %v3311_v39 = vpop.f32.mrf.mxu2  ;;  %1658 = vmatpush.msra.mxu1 %v1652_v23 }
 0x28d   : > { %1659 = vmatpush.msra.mxu1 %v1651_v33 }
 0x28f   : > { %1660 = vmatpush.msra.mxu1 %v1650_v43 }
 0x293   : > { %v3316_v44 = vpop.f32.mrf.mxu2 }
 0x29b   : > { %v1175_v59 = vpop.f32.mrf.mxu2 }
 0x29c   : > { %v1176_v1 = vadd.f32 %v1175_v59, %v3127_v10 }
 0x29e   : > { %v1274_v55 = vadd.f32 %v3327_v46, %v1176_v1 }
 0x2a0   : > { %v1306_v48 = vmax.f32 %v1274_v55, 0.0 }
 0x2a2   : > { %1374 = vmatmul.f32.vlgmr.msrb.gmra.mxu0 %v1306_v48 }
 0x2a3   : > { %v1178_v53 = vpop.f32.mrf.mxu2 }
 0x2a4   : > { %v1179_v7 = vadd.f32 %v1178_v53, %v3132_v13  ;;  %v1512_v13 = vld [vmem:[%s4245_s10 + $0x48] sm:$0xff]  ;;  %v1649_v53 = vld [vmem:[%s4248_s13 + $0x50] sm:$0xff] }
 0x2a5   : > { %1529 = vmatpush.msrb.mxu3 %v1512_v13  ;;  %1661 = vmatpush.msra.mxu1 %v1649_v53  ;;  %v1645_v53 = vld [vmem:[%s4248_s13 + $0x30] sm:$0xff] }
 0x2a6   : > { %v1275_v62 = vadd.f32 %v3327_v46, %v1179_v7 }
 0x2a7   : > { %1530 = vmatpush.msrb.mxu3 %v1511_v30  ;;  %v1504_v30 = vld [vmem:[%s4245_s10 + $0x8] sm:$0xff] }
 0x2a8   : > { %v1307_v10 = vmax.f32 %v1275_v62, 0.0 }
 0x2aa   : > { %1377 = vmatmul.f32.gmra.mxu0 %v1307_v10  ;;  %v1506_v10 = vld [vmem:[%s4245_s10 + $0x18] sm:$0xff] }
 0x2ab   : > { %v1181_v8 = vpop.f32.mrf.mxu2 }
 0x2ac   : > { %v1182_v18 = vadd.f32 %v1181_v8, %v3137_v2 }
 0x2ae   : > { %v1276_v57 = vadd.f32 %v3327_v46, %v1182_v18 }
 0x2b0   : > { %v1308_v0 = vmax.f32 %v1276_v57, 0.0 }
 0x2b2   : > { %1380 = vmatmul.f32.gmra.mxu0 %v1308_v0 }
 0x2b3   : > { %v1184_v56 = vpop.f32.mrf.mxu2 }
 0x2b4   : > { %v1185_v27 = vadd.f32 %v1184_v56, %v3142_v3  ;;  %v1510_v3 = vld [vmem:[%s4245_s10 + $0x38] sm:$0xff]  ;;  %v1220_v56 = vpop.f32.mrf.mxu3 }
 0x2b5   : > { %1531 = vmatpush.msrb.mxu3 %v1510_v3  ;;  %v1503_v3 = vld [vmem:[%s4245_s10] sm:$0xff] }
 0x2b6   : > { %v1277_v32 = vadd.f32 %v3327_v46, %v1185_v27 }
 0x2b7   : > { %1532 = vmatpush.msrb.mxu3 %v1509_v6 }
 0x2b8   : > { %v1309_v2 = vmax.f32 %v1277_v32, 0.0  ;;  %v1505_v32 = vld [vmem:[%s4245_s10 + $0x10] sm:$0xff] }
 0x2ba   : > { %1383 = vmatmul.f32.gmra.mxu0 %v1309_v2 }
 0x2bb   : > { %v1187_v35 = vpop.f32.mrf.mxu2 }
 0x2bc   : > { %v1188_v61 = vadd.f32 %v1187_v35, %v3147_v14  ;;  %v1223_v35 = vpop.f32.mrf.mxu3 }
 0x2be   : > { %v1278_v52 = vadd.f32 %v3327_v46, %v1188_v61 }
 0x2c0   : > { %v1310_v31 = vmax.f32 %v1278_v52, 0.0  ;;  %v1647_v52 = vld [vmem:[%s4248_s13 + $0x40] sm:$0xff] }
 0x2c2   : > { %1386 = vmatmul.f32.gmra.mxu0 %v1310_v31 }
 0x2c3   : > { %v1190_v34 = vpop.f32.mrf.mxu2 }
 0x2c4   : > { %v1191_v37 = vadd.f32 %v1190_v34, %v3152_v15  ;;  %v1508_v15 = vld [vmem:[%s4245_s10 + $0x28] sm:$0xff] }
 0x2c5   : > { %1533 = vmatpush.msrb.mxu3 %v1508_v15 }
 0x2c6   : > { %v1279_v41 = vadd.f32 %v3327_v46, %v1191_v37 }
 0x2c8   : > { %v1311_v14 = vmax.f32 %v1279_v41, 0.0  ;;  %v1226_v41 = vpop.f32.mrf.mxu3 }
 0x2ca   : > { %1389 = vmatmul.f32.gmra.mxu0 %v1311_v14 }
 0x2cb   : > { %v1193_v45 = vpop.f32.mrf.mxu2 }
 0x2cc   : > { %v1194_v50 = vadd.f32 %v1193_v45, %v3157_v24  ;;  %v1507_v24 = vld [vmem:[%s4245_s10 + $0x20] sm:$0xff] }
 0x2cd   : > { %1534 = vmatpush.msrb.mxu3 %v1507_v24 }
 0x2ce   : > { %v1280_v47 = vadd.f32 %v3327_v46, %v1194_v50  ;;  %v1646_v50 = vld [vmem:[%s4248_s13 + $0x38] sm:$0xff] }
 0x2cf   : > { %1535 = vmatpush.msrb.mxu3 %v1506_v10 }
 0x2d0   : > { %v1312_v59 = vmax.f32 %v1280_v47, 0.0  ;;  %v1229_v47 = vpop.f32.mrf.mxu3 }
 0x2d1   : > { %1536 = vmatpush.msrb.mxu3 %v1505_v32 }
 0x2d2   : > { %1392 = vmatmul.f32.gmra.mxu0 %v1312_v59 }
 0x2d3   : > { %v1196_v1 = vpop.f32.mrf.mxu2  ;;  %1537 = vmatpush.msrb.mxu3 %v1504_v30 }
 0x2d4   : > { %v1197_v63 = vadd.f32 %v1196_v1, %v3162_v49  ;;  %v1221_v1 = vadd.f32 %v1220_v56, %v3203_v26  ;;  %v3426_v26 = vld [vmem:[%s4244_s9] ss:$0 sm:$0xff] }
 0x2d5   : > { %1538 = vmatpush.msrb.mxu3 %v1503_v3  ;;  %v1643_v3 = vld [vmem:[%s4248_s13 + $0x20] sm:$0xff] }
 0x2d6   : > { %v1281_v55 = vadd.f32 %v3327_v46, %v1197_v63 }
 0x2d8   : > { %v1313_v48 = vmax.f32 %v1281_v55, 0.0  ;;  %v1232_v55 = vpop.f32.mrf.mxu3 }
 0x2da   : > { %1395 = vmatmul.f32.gmra.mxu0 %v1313_v48  ;;  %v1224_v48 = vadd.f32 %v1223_v35, %v3210_v21 }
 0x2db   : > { %v1199_v7 = vpop.f32.mrf.mxu2 }
 0x2dc   : > { %v1200_v20 = vadd.f32 %v1199_v7, %v3167_v11  ;;  %v1648_v11 = vld [vmem:[%s4248_s13 + $0x48] sm:$0xff] }
 0x2dd   : > { %1662 = vmatpush.msra.mxu1 %v1648_v11 }
 0x2de   : > { %v1282_v62 = vadd.f32 %v3327_v46, %v1200_v20 }
 0x2df   : > { %1663 = vmatpush.msra.mxu1 %v1647_v52 }
 0x2e0   : > { %v1314_v49 = vmax.f32 %v1282_v62, 0.0  ;;  %v1235_v7 = vpop.f32.mrf.mxu3  ;;  %v1227_v62 = vadd.f32 %v1226_v41, %v3217_v29 }
 0x2e1   : > { %1664 = vmatpush.msra.mxu1 %v1646_v50  ;;  %v1236_v35 = vadd.f32 %v1235_v7, %v3238_v12 }
 0x2e2   : > { %1398 = vmatmul.f32.gmra.mxu0 %v1314_v49 }
 0x2e3   : > { %v1202_v23 = vpop.f32.mrf.mxu2  ;;  %1665 = vmatpush.msra.mxu1 %v1645_v53 }
 0x2e4   : > { %v1203_v8 = vadd.f32 %v1202_v23, %v3172_v42  ;;  %v1291_v23 = vadd.f32 %v3327_v46, %v1227_v62  ;;  %v1641_v62 = vld [vmem:[%s4248_s13 + $0x10] sm:$0xff] }
 0x2e6   : > { %v1283_v18 = vadd.f32 %v3327_v46, %v1203_v8  ;;  %v1323_v11 = vmax.f32 %v1291_v23, 0.0 }
 0x2e8   : > { %v1315_v13 = vmax.f32 %v1283_v18, 0.0  ;;  %v1230_v18 = vadd.f32 %v1229_v47, %v3224_v5  ;;  %v1238_v29 = vpop.f32.mrf.mxu3  ;;  %v1233_v5 = vadd.f32 %v1232_v55, %v3231_v9 }
 0x2e9   : > { %v1239_v12 = vadd.f32 %v1238_v29, %v3245_v16 }
 0x2ea   : > { %1401 = vmatmul.f32.gmra.mxu0 %v1315_v13  ;;  %v1292_v56 = vadd.f32 %v3327_v46, %v1230_v18 }
 0x2eb   : > { %v1205_v57 = vpop.f32.mrf.mxu2 }
 0x2ec   : > { %v1206_v0 = vadd.f32 %v1205_v57, %v3177_v54 }
 0x2ee   : > { %v1284_v27 = vadd.f32 %v3327_v46, %v1206_v0  ;;  %v1644_v0 = vld [vmem:[%s4248_s13 + $0x28] sm:$0xff] }
 0x2ef   : > { %1666 = vmatpush.msra.mxu1 %v1644_v0  ;;  %v1972_v0 = vld [vmem:[%s4251_s16 + $0x78] sm:$0xff] }
 0x2f0   : > { %v1316_v42 = vmax.f32 %v1284_v27, 0.0  ;;  %1974 = vmatpush.msra.mxu0 %v1972_v0 }
 0x2f1   : > { %1667 = vmatpush.msra.mxu1 %v1643_v3  ;;  %v1640_v3 = vld [vmem:[%s4248_s13 + $0x8] sm:$0xff] }
 0x2f2   : > { %1404 = vmatmul.f32.gmra.mxu0 %v1316_v42  ;;  %v1324_v42 = vmax.f32 %v1292_v56, 0.0 }
 0x2f3   : > { %v1208_v2 = vpop.f32.mrf.mxu2 }
 0x2f4   : > { %v1209_v33 = vadd.f32 %v1208_v2, %v3182_v58  ;;  %v1241_v2 = vpop.f32.mrf.mxu3 }
 0x2f5   : > { %v1242_v50 = vadd.f32 %v1241_v2, %v3252_v19 }
 0x2f6   : > { %v1285_v54 = vadd.f32 %v3327_v46, %v1209_v33  ;;  %v1293_v33 = vadd.f32 %v3327_v46, %v1233_v5  ;;  %v1970_v5 = vld [vmem:[%s4251_s16 + $0x68] sm:$0xff] }
 0x2f8   : > { %v1317_v61 = vmax.f32 %v1285_v54, 0.0  ;;  %v1325_v9 = vmax.f32 %v1293_v33, 0.0 }
 0x2fa   : > { %1407 = vmatmul.f32.gmra.mxu0 %v1317_v61 }
 0x2fb   : > { %v1211_v31 = vpop.f32.mrf.mxu2 }
 0x2fc   : > { %v1212_v34 = vadd.f32 %v1211_v31, %v3188_v60  ;;  %v1294_v31 = vadd.f32 %v3327_v46, %v1236_v35  ;;  %v1969_v35 = vld [vmem:[%s4251_s16 + $0x60] sm:$0xff] }
 0x2fe   : > { %v1286_v58 = vadd.f32 %v3327_v46, %v1212_v34  ;;  %v1244_v34 = vpop.f32.mrf.mxu3  ;;  %v1326_v41 = vmax.f32 %v1294_v31, 0.0 }
 0x2ff   : > { %v1245_v19 = vadd.f32 %v1244_v34, %v3259_v22  ;;  %v1967_v34 = vld [vmem:[%s4251_s16 + $0x50] sm:$0xff] }
 0x300   : > { %v1318_v37 = vmax.f32 %v1286_v58, 0.0 }
 0x302   : > { %1410 = vmatmul.f32.gmra.mxu0 %v1318_v37 }
 0x303   : > { %v1214_v6 = vpop.f32.mrf.mxu2 }
 0x304   : > { %v1215_v14 = vadd.f32 %v1214_v6, %v3191_v17  ;;  %v1289_v17 = vadd.f32 %v3327_v46, %v1221_v1 }
 0x306   : > { %v1287_v43 = vadd.f32 %v3327_v46, %v1215_v14  ;;  %v1321_v24 = vmax.f32 %v1289_v17, 0.0  ;;  %v1295_v14 = vadd.f32 %v3327_v46, %v1239_v12 }
 0x308   : > { %v1319_v45 = vmax.f32 %v1287_v43, 0.0  ;;  %v1247_v43 = vpop.f32.mrf.mxu3  ;;  %v1327_v16 = vmax.f32 %v1295_v14, 0.0 }
 0x30a   : > { %1413 = vmatmul.f32.gmra.mxu0 %v1319_v45 }
 0x30b   : > { %v1217_v15 = vpop.f32.mrf.mxu2 }
 0x30c   : > { %v1218_v60 = vadd.f32 %v1217_v15, %v3197_v4  ;;  %v1290_v4 = vadd.f32 %v3327_v46, %v1224_v48 }
 0x30e   : > { %v1288_v59 = vadd.f32 %v3327_v46, %v1218_v60  ;;  %v1322_v49 = vmax.f32 %v1290_v4, 0.0  ;;  %v1642_v60 = vld [vmem:[%s4248_s13 + $0x18] sm:$0xff]  ;;  %v1248_v4 = vadd.f32 %v1247_v43, %v3266_v25 }
 0x30f   : > { %1668 = vmatpush.msra.mxu1 %v1642_v60  ;;  %v1964_v60 = vld [vmem:[%s4251_s16 + $0x38] sm:$0xff] }
 0x310   : > { %v1320_v63 = vmax.f32 %v1288_v59, 0.0  ;;  %v1296_v59 = vadd.f32 %v3327_v46, %v1242_v50  ;;  %v1250_v55 = vpop.f32.mrf.mxu3  ;;  %v1298_v23 = vadd.f32 %v3327_v46, %v1248_v4  ;;  %v1965_v50 = vld [vmem:[%s4251_s16 + $0x40] sm:$0xff] }
 0x311   : > { %1669 = vmatpush.msra.mxu1 %v1641_v62  ;;  %v1251_v25 = vadd.f32 %v1250_v55, %v3273_v28  ;;  %v1971_v28 = vld [vmem:[%s4251_s16 + $0x70] sm:$0xff]  ;;  %v1639_v62 = vld [vmem:[%s4248_s13] sm:$0xff] }
 0x312   : > { %1416 = vmatmul.f32.gmra.mxu0 %v1320_v63  ;;  %v1328_v17 = vmax.f32 %v1296_v59, 0.0 }
 0x313   : > { %v1299_v56 = vadd.f32 %v3327_v46, %v1251_v25  ;;  %1975 = vmatpush.msra.mxu0 %v1971_v28  ;;  %1670 = vmatpush.msra.mxu1 %v1640_v3  ;;  %v1957_v28 = vld [vmem:[%s4251_s16] sm:$0xff] }
 0x315   : > { %1976 = vmatpush.msra.mxu0 %v1970_v5  ;;  %1671 = vmatpush.msra.mxu1 %v1639_v62  ;;  %v3646_v62 = vld [vmem:[%s4246_s11] ss:$0 sm:$0xff] }
 0x317   : > { %1977 = vmatpush.msra.mxu0 %v1969_v35 }
 0x31a   : > { %1419 = vmatmul.f32.gmra.mxu0 %v1321_v24  ;;  %v1297_v24 = vadd.f32 %v3327_v46, %v1245_v19 }
 0x31c   : > { %v1329_v22 = vmax.f32 %v1297_v24, 0.0 }
 0x31f   : > { %v1375_v20 = vpop.f32.mrf.mxu0 }
 0x320   : > { %v3430_v21 = vadd.f32 %v3426_v26, %v1375_v20 }
 0x322   : > { %v1471_v10 = vmax.f32 %v3430_v21, 0.0  ;;  %1422 = vmatmul.f32.gmra.mxu0 %v1322_v49  ;;  %v1253_v49 = vpop.f32.mrf.mxu3 }
 0x323   : > { %v1254_v2 = vadd.f32 %v1253_v49, %v3280_v38  ;;  %v1968_v38 = vld [vmem:[%s4251_s16 + $0x58] sm:$0xff] }
 0x324   : > { %1539 = vmatmul.f32.vlgmr.msrb.gmra.mxu3 %v1471_v10  ;;  %1978 = vmatpush.msra.mxu0 %v1968_v38  ;;  %v1637_v38 = vld [vmem:[%s4247_s12 + $0x8] sm:$0xff] }
 0x325   : > { %v1300_v31 = vadd.f32 %v3327_v46, %v1254_v2 }
 0x326   : > { %1979 = vmatpush.msra.mxu0 %v1967_v34  ;;  %v1636_v34 = vld [vmem:[%s4247_s12] sm:$0xff] }
 0x327   : > { %v1378_v8 = vpop.f32.mrf.mxu0 }
 0x328   : > { %v3438_v13 = vadd.f32 %v3426_v26, %v1378_v8 }
 0x32a   : > { %1425 = vmatmul.f32.gmra.mxu0 %v1323_v11  ;;  %v1472_v57 = vmax.f32 %v3438_v13, 0.0  ;;  %v1330_v11 = vmax.f32 %v1298_v23, 0.0  ;;  %v1959_v23 = vld [vmem:[%s4251_s16 + $0x10] sm:$0xff] }
 0x32b   : > { %v2589_v13 = vld [vmem:[%s2747_s29 + $0x30] sm:$0xff] }
 0x32c   : > { %1542 = vmatmul.f32.gmra.mxu3 %v1472_v57 }
 0x32f   : > { %v1381_v27 = vpop.f32.mrf.mxu0 }
 0x330   : > { %v3449_v32 = vadd.f32 %v3426_v26, %v1381_v27  ;;  %v1256_v27 = vpop.f32.mrf.mxu3 }
 0x331   : > { %v1257_v14 = vadd.f32 %v1256_v27, %v3287_v51  ;;  %v1963_v51 = vld [vmem:[%s4251_s16 + $0x30] sm:$0xff] }
 0x332   : > { %1428 = vmatmul.f32.gmra.mxu0 %v1324_v42  ;;  %v1473_v30 = vmax.f32 %v3449_v32, 0.0  ;;  %v2590_v32 = vld [vmem:[%s2747_s29 + $0x38] sm:$0xff] }
 0x333   : > { %v1301_v59 = vadd.f32 %v3327_v46, %v1257_v14 }
 0x334   : > { %1545 = vmatmul.f32.gmra.mxu3 %v1473_v30 }
 0x335   : > { %v1333_v24 = vmax.f32 %v1301_v59, 0.0 }
 0x337   : > { %v1384_v54 = vpop.f32.mrf.mxu0 }
 0x338   : > { %v3457_v61 = vadd.f32 %v3426_v26, %v1384_v54  ;;  %v1331_v54 = vmax.f32 %v1299_v56, 0.0  ;;  %v1259_v12 = vpop.f32.mrf.mxu3 }
 0x33a   : > { %1431 = vmatmul.f32.gmra.mxu0 %v1325_v9  ;;  %v1474_v52 = vmax.f32 %v3457_v61, 0.0  ;;  %v2591_v61 = vld [vmem:[%s2747_s29 + $0x40] sm:$0xff] }
 0x33c   : > { %1548 = vmatmul.f32.gmra.mxu3 %v1474_v52 }
 0x33f   : > { %v1387_v58 = vpop.f32.mrf.mxu0 }
 0x340   : > { %v3468_v37 = vadd.f32 %v3426_v26, %v1387_v58  ;;  %v1966_v58 = vld [vmem:[%s4251_s16 + $0x48] sm:$0xff]  ;;  %v1262_v4 = vpop.f32.mrf.mxu3 }
 0x341   : > { %1980 = vmatpush.msra.mxu0 %v1966_v58  ;;  %v2584_v58 = vld [vmem:[%s2747_s29 + $0x8] sm:$0xff] }
 0x342   : > { %1434 = vmatmul.f32.gmra.mxu0 %v1326_v41  ;;  %v1475_v6 = vmax.f32 %v3468_v37, 0.0  ;;  %v2592_v37 = vld [vmem:[%s2747_s29 + $0x48] sm:$0xff] }
 0x343   : > { %1981 = vmatpush.msra.mxu0 %v1965_v50 }
 0x344   : > { %1551 = vmatmul.f32.gmra.mxu3 %v1475_v6 }
 0x345   : > { %1982 = vmatpush.msra.mxu0 %v1964_v60 }
 0x347   : > { %v1390_v45 = vpop.f32.mrf.mxu0  ;;  %1983 = vmatpush.msra.mxu0 %v1963_v51  ;;  %v2585_v51 = vld [vmem:[%s2747_s29 + $0x10] sm:$0xff] }
 0x348   : > { %v3476_v47 = vadd.f32 %v3426_v26, %v1390_v45  ;;  %v1332_v45 = vmax.f32 %v1300_v31, 0.0  ;;  %v1265_v5 = vpop.f32.mrf.mxu3 }
 0x34a   : > { %1437 = vmatmul.f32.gmra.mxu0 %v1327_v16  ;;  %v1476_v15 = vmax.f32 %v3476_v47, 0.0  ;;  %v2593_v47 = vld [vmem:[%s2747_s29 + $0x50] sm:$0xff] }
 0x34c   : > { %1554 = vmatmul.f32.gmra.mxu3 %v1476_v15 }
 0x34f   : > { %v1393_v1 = vpop.f32.mrf.mxu0 }
 0x350   : > { %v3487_v63 = vadd.f32 %v3426_v26, %v1393_v1  ;;  %v1962_v1 = vld [vmem:[%s4251_s16 + $0x28] sm:$0xff] }
 0x351   : > { %1984 = vmatpush.msra.mxu0 %v1962_v1 }
 0x352   : > { %1440 = vmatmul.f32.gmra.mxu0 %v1328_v17  ;;  %v1477_v48 = vmax.f32 %v3487_v63, 0.0  ;;  %v1260_v17 = vadd.f32 %v1259_v12, %v3294_v36  ;;  %v1960_v36 = vld [vmem:[%s4251_s16 + $0x18] sm:$0xff]  ;;  %v1268_v12 = vpop.f32.mrf.mxu3 }
 0x353   : > { %v1269_v14 = vadd.f32 %v1268_v12, %v3316_v44  ;;  %v2594_v63 = vld [vmem:[%s2747_s29 + $0x58] sm:$0xff] }
 0x354   : > { %1557 = vmatmul.f32.gmra.mxu3 %v1477_v48  ;;  %v1302_v49 = vadd.f32 %v3327_v46, %v1260_v17 }
 0x355   : > { %v1305_v59 = vadd.f32 %v3327_v46, %v1269_v14 }
 0x356   : > { %v1334_v56 = vmax.f32 %v1302_v49, 0.0 }
 0x357   : > { %v1396_v53 = vpop.f32.mrf.mxu0  ;;  %v1337_v44 = vmax.f32 %v1305_v59, 0.0 }
 0x358   : > { %v3495_v7 = vadd.f32 %v3426_v26, %v1396_v53  ;;  %v1961_v53 = vld [vmem:[%s4251_s16 + $0x20] sm:$0xff] }
 0x359   : > { %1985 = vmatpush.msra.mxu0 %v1961_v53 }
 0x35a   : > { %v1478_v20 = vmax.f32 %v3495_v7, 0.0  ;;  %1443 = vmatmul.f32.gmra.mxu0 %v1329_v22  ;;  %v2595_v7 = vld [vmem:[%s2747_s29 + $0x60] sm:$0xff] }
 0x35b   : > { %1986 = vmatpush.msra.mxu0 %v1960_v36  ;;  %v2587_v36 = vld [vmem:[%s2747_s29 + $0x20] sm:$0xff] }
 0x35c   : > { %1560 = vmatmul.f32.gmra.mxu3 %v1478_v20 }
 0x35d   : > { %1987 = vmatpush.msra.mxu0 %v1959_v23 }
 0x35f   : > { %v1399_v8 = vpop.f32.mrf.mxu0 }
 0x360   : > { %v3506_v18 = vadd.f32 %v3426_v26, %v1399_v8  ;;  %v1958_v8 = vld [vmem:[%s4251_s16 + $0x8] sm:$0xff] }
 0x361   : > { %1988 = vmatpush.msra.mxu0 %v1958_v8 }
 0x362   : > { %v1479_v29 = vmax.f32 %v3506_v18, 0.0  ;;  %1446 = vmatmul.f32.gmra.mxu0 %v1330_v11  ;;  %v1263_v11 = vadd.f32 %v1262_v4, %v3301_v40  ;;  %v1638_v40 = vld [vmem:[%s4247_s12 + $0x10] sm:$0xff]  ;;  %v2596_v18 = vld [vmem:[%s2747_s29 + $0x68] sm:$0xff] }
 0x363   : > { %1989 = vmatpush.msra.mxu0 %v1957_v28  ;;  %2566 = vmatpush.msra.mxu2 %v1638_v40 }
 0x364   : > { %1563 = vmatmul.f32.gmra.mxu3 %v1479_v29  ;;  %1782 = vmatpush.msrb.mxu1 %v1638_v40 }
 0x365   : > { %2567 = vmatpush.msra.mxu2 %v1637_v38 }
 0x366   : > { %1783 = vmatpush.msrb.mxu1 %v1637_v38 }
 0x367   : > { %v1402_v42 = vpop.f32.mrf.mxu0  ;;  %2568 = vmatpush.msra.mxu2 %v1636_v34 }
 0x368   : > { %v3523_v33 = vadd.f32 %v3426_v26, %v1402_v42  ;;  %v1303_v42 = vadd.f32 %v3327_v46, %v1263_v11  ;;  %1784 = vmatpush.msrb.mxu1 %v1636_v34  ;;  %2495 = vmatmul.msk.f32.vlgmr.msra.gmra.mxu2 %vm618_vm0, %v2584_v58 }
 0x36a   : > { %v1480_v9 = vmax.f32 %v3523_v33, 0.0  ;;  %1449 = vmatmul.f32.gmra.mxu0 %v1331_v54  ;;  %v1266_v54 = vadd.f32 %v1265_v5, %v3311_v39  ;;  %v1335_v3 = vmax.f32 %v1303_v42, 0.0  ;;  %v2597_v33 = vld [vmem:[%s2747_s29 + $0x70] sm:$0xff] }
 0x36c   : > { %1566 = vmatmul.f32.gmra.mxu3 %v1480_v9  ;;  %v1304_v39 = vadd.f32 %v3327_v46, %v1266_v54 }
 0x36e   : > { %v1336_v50 = vmax.f32 %v1304_v39, 0.0 }
 0x36f   : > { %v1405_v41 = vpop.f32.mrf.mxu0 }
 0x370   : > { %v3546_v43 = vadd.f32 %v3426_v26, %v1405_v41  ;;  %2496 = vmatmul.msk.f32.gmra.mxu2 %vm618_vm0, %v2585_v51 }
 0x372   : > { %v1481_v16 = vmax.f32 %v3546_v43, 0.0  ;;  %1452 = vmatmul.f32.gmra.mxu0 %v1332_v45  ;;  %v2598_v43 = vld [vmem:[%s2747_s29 + $0x78] sm:$0xff] }
 0x374   : > { %1569 = vmatmul.f32.gmra.mxu3 %v1481_v16 }
 0x377   : > { %v1408_v19 = vpop.f32.mrf.mxu0 }
 0x378   : > { %v3566_v55 = vadd.f32 %v3426_v26, %v1408_v19 }
 0x37a   : > { %v1482_v22 = vmax.f32 %v3566_v55, 0.0  ;;  %1455 = vmatmul.f32.gmra.mxu0 %v1333_v24  ;;  %v2586_v24 = vld [vmem:[%s2747_s29 + $0x18] sm:$0xff]  ;;  %v2599_v55 = vld [vmem:[%s2747_s29 + $0x80] sm:$0xff] }
 0x37b   : > { %2497 = vmatmul.msk.f32.gmra.mxu2 %vm618_vm0, %v2586_v24 }
 0x37c   : > { %1572 = vmatmul.f32.gmra.mxu3 %v1482_v22 }
 0x37f   : > { %v1411_v25 = vpop.f32.mrf.mxu0 }
 0x380   : > { %v3589_v0 = vadd.f32 %v3426_v26, %v1411_v25  ;;  %v2588_v25 = vld [vmem:[%s2747_s29 + $0x28] sm:$0xff] }
 0x382   : > { %v1483_v27 = vmax.f32 %v3589_v0, 0.0  ;;  %1458 = vmatmul.f32.gmra.mxu0 %v1334_v56  ;;  %v1956_v0 = vld [vmem:[%s4250_s15 + $0x38] sm:$0xff] }
 0x383   : > { %2498 = vmatmul.msk.f32.gmra.mxu2 %vm618_vm0, %v2587_v36  ;;  %2192 = vmatpush.msra.mxu3 %v1956_v0 }
 0x384   : > { %1575 = vmatmul.f32.gmra.mxu3 %v1483_v27 }
 0x387   : > { %v1414_v2 = vpop.f32.mrf.mxu0 }
 0x388   : > { %v3603_v35 = vadd.f32 %v3426_v26, %v1414_v2 }
 0x38a   : > { %v1484_v31 = vmax.f32 %v3603_v35, 0.0  ;;  %1461 = vmatmul.f32.gmra.mxu0 %v1335_v3 }
 0x38b   : > { %2499 = vmatmul.msk.f32.gmra.mxu2 %vm618_vm0, %v2588_v25 }
 0x38c   : > { %1578 = vmatmul.f32.gmra.mxu3 %v1484_v31 }
 0x38f   : > { %v1417_v41 = vpop.f32.mrf.mxu0 }
 0x390   : > { %v3619_v45 = vadd.f32 %v3426_v26, %v1417_v41 }
 0x392   : > { %v1485_v60 = vmax.f32 %v3619_v45, 0.0  ;;  %1464 = vmatmul.f32.gmra.mxu0 %v1336_v50  ;;  %v2602_v45 = vld [vmem:[%s2747_s29 + $0x98] sm:$0xff] }
 0x393   : > { %2500 = vmatmul.msk.f32.gmra.mxu2 %vm618_vm0, %v2589_v13 }
 0x394   : > { %1581 = vmatmul.f32.gmra.mxu3 %v1485_v60 }
 0x397   : > { %v1420_v1 = vpop.f32.mrf.mxu0 }
 0x398   : > { %v3628_v19 = vadd.f32 %v3426_v26, %v1420_v1 }
 0x39a   : > { %v1486_v17 = vmax.f32 %v3628_v19, 0.0  ;;  %1467 = vmatmul.f32.gmra.mxu0 %v1337_v44 }
 0x39b   : > { %2501 = vmatmul.msk.f32.gmra.mxu2 %vm618_vm0, %v2590_v32 }
 0x39c   : > { %1584 = vmatmul.f32.gmra.mxu3 %v1486_v17 }
 0x39f   : > { %v1423_v46 = vpop.f32.mrf.mxu0 }
 0x3a0   : > { %v3636_v53 = vadd.f32 %v3426_v26, %v1423_v46 }
 0x3a2   : > { %v1487_v4 = vmax.f32 %v3636_v53, 0.0  ;;  %1990 = vmatmul.f32.vlgmr.msra.gmra.mxu0 %v1471_v10  ;;  %v1955_v53 = vld [vmem:[%s4250_s15 + $0x30] sm:$0xff] }
 0x3a3   : > { %2502 = vmatmul.msk.f32.gmra.mxu2 %vm618_vm0, %v2591_v61  ;;  %2193 = vmatpush.msra.mxu3 %v1955_v53 }
 0x3a4   : > { %1587 = vmatmul.f32.gmra.mxu3 %v1487_v4 }
 0x3a7   : > { %v1426_v49 = vpop.f32.mrf.mxu0  ;;  %v1540_v23 = vpop.f32.mrf.mxu3 }
 0x3a8   : > { %v3651_v8 = vadd.f32 %v3426_v26, %v1426_v49  ;;  %v1541_v21 = vadd.f32 %v3646_v62, %v1540_v23 }
 0x3aa   : > { %v1488_v10 = vmax.f32 %v3651_v8, 0.0  ;;  %1672 = vmatmul.f32.vlgmr.msra.gmra.mxu1 %v1541_v21  ;;  %1993 = vmatmul.f32.gmra.mxu0 %v1472_v57  ;;  %v2605_v8 = vld [vmem:[%s2747_s29 + $0xb0] sm:$0xff] }
 0x3ab   : > { %2503 = vmatmul.msk.f32.gmra.mxu2 %vm618_vm0, %v2592_v37 }
 0x3ac   : > { %1590 = vmatmul.f32.gmra.mxu3 %v1488_v10 }
 0x3af   : > { %v1429_v11 = vpop.f32.mrf.mxu0  ;;  %v1543_v56 = vpop.f32.mrf.mxu3 }
 0x3b0   : > { %v3662_v28 = vadd.f32 %v3426_v26, %v1429_v11  ;;  %v1544_v5 = vadd.f32 %v3646_v62, %v1543_v56 }
 0x3b2   : > { %v1489_v42 = vmax.f32 %v3662_v28, 0.0  ;;  %1675 = vmatmul.f32.gmra.mxu1 %v1544_v5  ;;  %1996 = vmatmul.f32.gmra.mxu0 %v1473_v30 }
 0x3b3   : > { %2504 = vmatmul.msk.f32.gmra.mxu2 %vm618_vm0, %v2593_v47 }
 0x3b4   : > { %1593 = vmatmul.f32.gmra.mxu3 %v1489_v42 }
 0x3b7   : > { %v1432_v57 = vpop.f32.mrf.mxu0  ;;  %v1546_v40 = vpop.f32.mrf.mxu3 }
 0x3b8   : > { %v3673_v2 = vadd.f32 %v3426_v26, %v1432_v57  ;;  %v1547_v54 = vadd.f32 %v3646_v62, %v1546_v40 }
 0x3ba   : > { %v1490_v3 = vmax.f32 %v3673_v2, 0.0  ;;  %1678 = vmatmul.f32.gmra.mxu1 %v1547_v54  ;;  %1999 = vmatmul.f32.gmra.mxu0 %v1474_v52 }
 0x3bb   : > { %2505 = vmatmul.msk.f32.gmra.mxu2 %vm618_vm0, %v2594_v63 }
 0x3bc   : > { %1596 = vmatmul.f32.gmra.mxu3 %v1490_v3 }
 0x3bf   : > { %v1435_v30 = vpop.f32.mrf.mxu0  ;;  %v1549_v38 = vpop.f32.mrf.mxu3 }
 0x3c0   : > { %v3684_v34 = vadd.f32 %v3426_v26, %v1435_v30  ;;  %v1550_v39 = vadd.f32 %v3646_v62, %v1549_v38 }
 0x3c2   : > { %v1491_v58 = vmax.f32 %v3684_v34, 0.0  ;;  %1681 = vmatmul.f32.gmra.mxu1 %v1550_v39  ;;  %2002 = vmatmul.f32.gmra.mxu0 %v1475_v6  ;;  %v1954_v34 = vld [vmem:[%s4250_s15 + $0x28] sm:$0xff] }
 0x3c3   : > { %2506 = vmatmul.msk.f32.gmra.mxu2 %vm618_vm0, %v2595_v7  ;;  %2194 = vmatpush.msra.mxu3 %v1954_v34 }
 0x3c4   : > { %1599 = vmatmul.f32.gmra.mxu3 %v1491_v58 }
 0x3c7   : > { %v1438_v52 = vpop.f32.mrf.mxu0  ;;  %v1552_v12 = vpop.f32.mrf.mxu3 }
 0x3c8   : > { %v3695_v41 = vadd.f32 %v3426_v26, %v1438_v52  ;;  %v1553_v14 = vadd.f32 %v3646_v62, %v1552_v12 }
 0x3ca   : > { %v1492_v50 = vmax.f32 %v3695_v41, 0.0  ;;  %1684 = vmatmul.f32.gmra.mxu1 %v1553_v14  ;;  %2005 = vmatmul.f32.gmra.mxu0 %v1476_v15 }
 0x3cb   : > { %2507 = vmatmul.msk.f32.gmra.mxu2 %vm618_vm0, %v2596_v18 }
 0x3cc   : > { %1602 = vmatmul.f32.gmra.mxu3 %v1492_v50 }
 0x3cf   : > { %v1441_v6 = vpop.f32.mrf.mxu0  ;;  %v1555_v59 = vpop.f32.mrf.mxu3 }
 0x3d0   : > { %v3706_v51 = vadd.f32 %v3426_v26, %v1441_v6  ;;  %v1556_v1 = vadd.f32 %v3646_v62, %v1555_v59 }
 0x3d2   : > { %v1493_v44 = vmax.f32 %v3706_v51, 0.0  ;;  %1687 = vmatmul.f32.gmra.mxu1 %v1556_v1  ;;  %2008 = vmatmul.f32.gmra.mxu0 %v1477_v48 }
 0x3d3   : > { %2508 = vmatmul.msk.f32.gmra.mxu2 %vm618_vm0, %v2597_v33 }
 0x3d4   : > { %1605 = vmatmul.f32.gmra.mxu3 %v1493_v44 }
 0x3d7   : > { %v1444_v15 = vpop.f32.mrf.mxu0  ;;  %v1558_v24 = vpop.f32.mrf.mxu3 }
 0x3d8   : > { %v3717_v46 = vadd.f32 %v3426_v26, %v1444_v15  ;;  %v1559_v36 = vadd.f32 %v3646_v62, %v1558_v24 }
 0x3da   : > { %v1494_v49 = vmax.f32 %v3717_v46, 0.0  ;;  %1690 = vmatmul.f32.gmra.mxu1 %v1559_v36  ;;  %2011 = vmatmul.f32.gmra.mxu0 %v1478_v20 }
 0x3db   : > { %2509 = vmatmul.msk.f32.gmra.mxu2 %vm618_vm0, %v2598_v43 }
 0x3dc   : > { %1608 = vmatmul.f32.gmra.mxu3 %v1494_v49 }
 0x3df   : > { %v1447_v48 = vpop.f32.mrf.mxu0  ;;  %v1561_v23 = vpop.f32.mrf.mxu3 }
 0x3e0   : > { %v3728_v21 = vadd.f32 %v3426_v26, %v1447_v48  ;;  %v1562_v25 = vadd.f32 %v3646_v62, %v1561_v23  ;;  %v2601_v48 = vld [vmem:[%s2747_s29 + $0x90] sm:$0xff] }
 0x3e2   : > { %v1495_v11 = vmax.f32 %v3728_v21, 0.0  ;;  %1693 = vmatmul.f32.gmra.mxu1 %v1562_v25  ;;  %2014 = vmatmul.f32.gmra.mxu0 %v1479_v29  ;;  %v1953_v21 = vld [vmem:[%s4250_s15 + $0x20] sm:$0xff] }
 0x3e3   : > { %2510 = vmatmul.msk.f32.gmra.mxu2 %vm618_vm0, %v2599_v55  ;;  %v2608_v55 = vld [vmem:[%s2747_s29 + $0xc8] sm:$0xff]  ;;  %2195 = vmatpush.msra.mxu3 %v1953_v21 }
 0x3e4   : > { %1611 = vmatmul.f32.gmra.mxu3 %v1495_v11 }
 0x3e7   : > { %v1450_v20 = vpop.f32.mrf.mxu0  ;;  %v1564_v56 = vpop.f32.mrf.mxu3 }
 0x3e8   : > { %v3739_v5 = vadd.f32 %v3426_v26, %v1450_v20  ;;  %v1565_v13 = vadd.f32 %v3646_v62, %v1564_v56 }
 0x3ea   : > { %v1496_v57 = vmax.f32 %v3739_v5, 0.0  ;;  %1696 = vmatmul.f32.gmra.mxu1 %v1565_v13  ;;  %2017 = vmatmul.f32.gmra.mxu0 %v1480_v9  ;;  %v2613_v5 = vld [vmem:[%s2747_s29 + $0xf0] sm:$0xff] }
 0x3ec   : > { %1614 = vmatmul.f32.gmra.mxu3 %v1496_v57 }
 0x3ef   : > { %v1453_v29 = vpop.f32.mrf.mxu0  ;;  %v1567_v40 = vpop.f32.mrf.mxu3 }
 0x3f0   : > { %v3750_v54 = vadd.f32 %v3426_v26, %v1453_v29  ;;  %v1568_v32 = vadd.f32 %v3646_v62, %v1567_v40  ;;  %v2604_v29 = vld [vmem:[%s2747_s29 + $0xa8] sm:$0xff] }
 0x3f2   : > { %v1497_v30 = vmax.f32 %v3750_v54, 0.0  ;;  %1699 = vmatmul.f32.gmra.mxu1 %v1568_v32  ;;  %2020 = vmatmul.f32.gmra.mxu0 %v1481_v16 }
 0x3f4   : > { %1617 = vmatmul.f32.gmra.mxu3 %v1497_v30 }
 0x3f7   : > { %v1456_v9 = vpop.f32.mrf.mxu0  ;;  %v1570_v38 = vpop.f32.mrf.mxu3 }
 0x3f8   : > { %v3761_v39 = vadd.f32 %v3426_v26, %v1456_v9  ;;  %v1571_v61 = vadd.f32 %v3646_v62, %v1570_v38  ;;  %v2606_v38 = vld [vmem:[%s2747_s29 + $0xb8] sm:$0xff] }
 0x3fa   : > { %v1498_v52 = vmax.f32 %v3761_v39, 0.0  ;;  %1702 = vmatmul.f32.gmra.mxu1 %v1571_v61  ;;  %2023 = vmatmul.f32.gmra.mxu0 %v1482_v22 }
 0x3fc   : > { %1620 = vmatmul.f32.gmra.mxu3 %v1498_v52 }
 0x3ff   : > { %v1459_v16 = vpop.f32.mrf.mxu0  ;;  %v1573_v12 = vpop.f32.mrf.mxu3 }
 0x400   : > { %v3772_v14 = vadd.f32 %v3426_v26, %v1459_v16  ;;  %v1574_v37 = vadd.f32 %v3646_v62, %v1573_v12  ;;  %v2607_v16 = vld [vmem:[%s2747_s29 + $0xc0] sm:$0xff] }
 0x402   : > { %v1499_v6 = vmax.f32 %v3772_v14, 0.0  ;;  %1705 = vmatmul.f32.gmra.mxu1 %v1574_v37  ;;  %2026 = vmatmul.f32.gmra.mxu0 %v1483_v27  ;;  %v2600_v27 = vld [vmem:[%s2747_s29 + $0x88] sm:$0xff] }
 0x403   : > { %2511 = vmatmul.msk.f32.gmra.mxu2 %vm618_vm0, %v2600_v27 }
 0x404   : > { %1623 = vmatmul.f32.gmra.mxu3 %v1499_v6 }
 0x407   : > { %v1462_v22 = vpop.f32.mrf.mxu0  ;;  %v1576_v59 = vpop.f32.mrf.mxu3 }
 0x408   : > { %v3783_v1 = vadd.f32 %v3426_v26, %v1462_v22  ;;  %v1577_v47 = vadd.f32 %v3646_v62, %v1576_v59 }
 0x40a   : > { %v1500_v15 = vmax.f32 %v3783_v1, 0.0  ;;  %1708 = vmatmul.f32.gmra.mxu1 %v1577_v47  ;;  %2029 = vmatmul.f32.gmra.mxu0 %v1484_v31  ;;  %v2609_v47 = vld [vmem:[%s2747_s29 + $0xd0] sm:$0xff] }
 0x40b   : > { %2512 = vmatmul.msk.f32.gmra.mxu2 %vm618_vm0, %v2601_v48 }
 0x40c   : > { %1626 = vmatmul.f32.gmra.mxu3 %v1500_v15 }
 0x40f   : > { %v1465_v24 = vpop.f32.mrf.mxu0  ;;  %v1579_v36 = vpop.f32.mrf.mxu3 }
 0x410   : > { %v3797_v63 = vadd.f32 %v3426_v26, %v1465_v24  ;;  %v1580_v35 = vadd.f32 %v3646_v62, %v1579_v36  ;;  %v2610_v36 = vld [vmem:[%s2747_s29 + $0xd8] sm:$0xff] }
 0x412   : > { %v1501_v31 = vmax.f32 %v3797_v63, 0.0  ;;  %1711 = vmatmul.f32.gmra.mxu1 %v1580_v35  ;;  %2032 = vmatmul.f32.gmra.mxu0 %v1485_v60  ;;  %v2615_v63 = vld [vmem:[%s2747_s29] sm:$0xff] }
 0x413   : > { %2513 = vmatmul.msk.f32.gmra.mxu2 %vm618_vm0, %v2602_v45 }
 0x414   : > { %1629 = vmatmul.f32.gmra.mxu3 %v1501_v31 }
 0x417   : > { %v1468_v23 = vpop.f32.mrf.mxu0  ;;  %v1582_v25 = vpop.f32.mrf.mxu3 }
 0x418   : > { %v3808_v7 = vadd.f32 %v3426_v26, %v1468_v23  ;;  %v1583_v20 = vadd.f32 %v3646_v62, %v1582_v25  ;;  %v2603_v26 = vld [vmem:[%s2747_s29 + $0xa0] sm:$0xff] }
 0x419   : > { %v2611_v25 = vld [vmem:[%s2747_s29 + $0xe0] sm:$0xff] }
 0x41a   : > { %v1502_v56 = vmax.f32 %v3808_v7, 0.0  ;;  %1714 = vmatmul.f32.gmra.mxu1 %v1583_v20  ;;  %2035 = vmatmul.f32.gmra.mxu0 %v1486_v17 }
 0x41b   : > { %2514 = vmatmul.msk.f32.gmra.mxu2 %vm618_vm0, %v2603_v26 }
 0x41c   : > { %1632 = vmatmul.f32.gmra.mxu3 %v1502_v56 }
 0x41f   : > { %v1585_v60 = vpop.f32.mrf.mxu3  ;;  %v3873_v41 = vpop.f32.mrf.mxu0 }
 0x420   : > { %v1586_v13 = vadd.f32 %v3646_v62, %v1585_v60 }
 0x422   : > { %1717 = vmatmul.f32.gmra.mxu1 %v1586_v13  ;;  %2038 = vmatmul.f32.gmra.mxu0 %v1487_v4  ;;  %v2612_v13 = vld [vmem:[%s2747_s29 + $0xe8] sm:$0xff] }
 0x423   : > { %2515 = vmatmul.msk.f32.gmra.mxu2 %vm618_vm0, %v2604_v29 }
 0x427   : > { %v1588_v19 = vpop.f32.mrf.mxu3  ;;  %v3823_v18 = vpop.f32.mrf.mxu1 }
 0x428   : > { %v1589_v17 = vadd.f32 %v3646_v62, %v1588_v19  ;;  %v3886_v51 = vpop.f32.mrf.mxu0 }
 0x42a   : > { %1720 = vmatmul.f32.gmra.mxu1 %v1589_v17  ;;  %2041 = vmatmul.f32.gmra.mxu0 %v1488_v10 }
 0x42b   : > { %2516 = vmatmul.msk.f32.gmra.mxu2 %vm618_vm0, %v2605_v8 }
 0x42f   : > { %v1591_v4 = vpop.f32.mrf.mxu3  ;;  %v3833_v40 = vpop.f32.mrf.mxu1 }
 0x430   : > { %v1592_v32 = vadd.f32 %v3646_v62, %v1591_v4  ;;  %v3899_v20 = vpop.f32.mrf.mxu0 }
 0x432   : > { %1723 = vmatmul.f32.gmra.mxu1 %v1592_v32  ;;  %2044 = vmatmul.f32.gmra.mxu0 %v1489_v42  ;;  %v3849_v42 = vpop.f32.mrf.mxu2 }
 0x433   : > { %2517 = vmatmul.msk.f32.gmra.mxu2 %vm618_vm0, %v2606_v38 }
 0x437   : > { %v1594_v10 = vpop.f32.mrf.mxu3  ;;  %v3840_v33 = vpop.f32.mrf.mxu1 }
 0x438   : > { %v1595_v9 = vadd.f32 %v3646_v62, %v1594_v10  ;;  %v3914_v17 = vpop.f32.mrf.mxu0  ;;  %v2614_v10 = vld [vmem:[%s2747_s29 + $0xf8] sm:$0xff] }
 0x43a   : > { %1726 = vmatmul.f32.gmra.mxu1 %v1595_v9  ;;  %2047 = vmatmul.f32.gmra.mxu0 %v1490_v3  ;;  %v3859_v37 = vpop.f32.mrf.mxu2 }
 0x43b   : > { %2518 = vmatmul.msk.f32.gmra.mxu2 %vm618_vm0, %v2607_v16 }
 0x43f   : > { %v1597_v61 = vpop.f32.mrf.mxu3  ;;  %v3847_v28 = vpop.f32.mrf.mxu1 }
 0x440   : > { %v1598_v43 = vadd.f32 %v3646_v62, %v1597_v61  ;;  %v3927_v32 = vpop.f32.mrf.mxu0 }
 0x442   : > { %1729 = vmatmul.f32.gmra.mxu1 %v1598_v43  ;;  %2050 = vmatmul.f32.gmra.mxu0 %v1491_v58  ;;  %v1952_v43 = vld [vmem:[%s4250_s15 + $0x18] sm:$0xff] }
 0x443   : > { %2519 = vmatmul.msk.f32.gmra.mxu2 %vm618_vm0, %v2608_v55  ;;  %2196 = vmatpush.msra.mxu3 %v1952_v43 }
 0x447   : > { %v1600_v2 = vpop.f32.mrf.mxu3  ;;  %v3856_v3 = vpop.f32.mrf.mxu1 }
 0x448   : > { %v1601_v12 = vadd.f32 %v3646_v62, %v1600_v2  ;;  %v3938_v38 = vpop.f32.mrf.mxu0 }
 0x44a   : > { %1732 = vmatmul.f32.gmra.mxu1 %v1601_v12  ;;  %2053 = vmatmul.f32.gmra.mxu0 %v1492_v50  ;;  %v3875_v50 = vpop.f32.mrf.mxu2 }
 0x44b   : > { %2520 = vmatmul.msk.f32.gmra.mxu2 %vm618_vm0, %v2609_v47 }
 0x44f   : > { %v1603_v58 = vpop.f32.mrf.mxu3  ;;  %v3868_v22 = vpop.f32.mrf.mxu1 }
 0x450   : > { %v1604_v59 = vadd.f32 %v3646_v62, %v1603_v58  ;;  %v3950_v14 = vpop.f32.mrf.mxu0 }
 0x452   : > { %1735 = vmatmul.f32.gmra.mxu1 %v1604_v59  ;;  %2056 = vmatmul.f32.gmra.mxu0 %v1493_v44  ;;  %v3888_v44 = vpop.f32.mrf.mxu2 }
 0x453   : > { %2521 = vmatmul.msk.f32.gmra.mxu2 %vm618_vm0, %v2610_v36 }
 0x457   : > { %v1606_v0 = vpop.f32.mrf.mxu3  ;;  %v3879_v27 = vpop.f32.mrf.mxu1 }
 0x458   : > { %v1607_v24 = vadd.f32 %v3646_v62, %v1606_v0  ;;  %v3958_v55 = vpop.f32.mrf.mxu0 }
 0x45a   : > { %1738 = vmatmul.f32.gmra.mxu1 %v1607_v24  ;;  %2059 = vmatmul.f32.gmra.mxu0 %v1494_v49  ;;  %v3901_v45 = vpop.f32.mrf.mxu2 }
 0x45b   : > { %2522 = vmatmul.msk.f32.gmra.mxu2 %vm618_vm0, %v2611_v25 }
 0x45f   : > { %v1609_v35 = vpop.f32.mrf.mxu3  ;;  %v3890_v48 = vpop.f32.mrf.mxu1 }
 0x460   : > { %v1610_v23 = vadd.f32 %v3646_v62, %v1609_v35 }
 0x462   : > { %1741 = vmatmul.f32.gmra.mxu1 %v1610_v23  ;;  %2062 = vmatmul.f32.gmra.mxu0 %v1495_v11  ;;  %v3916_v29 = vpop.f32.mrf.mxu2 }
 0x463   : > { %2523 = vmatmul.msk.f32.gmra.mxu2 %vm618_vm0, %v2612_v13 }
 0x467   : > { %v1612_v46 = vpop.f32.mrf.mxu3  ;;  %v3897_v49 = vpop.f32.mrf.mxu1 }
 0x468   : > { %v1613_v60 = vadd.f32 %v3646_v62, %v1612_v46  ;;  %v1949_v46 = vld [vmem:[%s4250_s15] sm:$0xff] }
 0x46a   : > { %1744 = vmatmul.f32.gmra.mxu1 %v1613_v60  ;;  %2065 = vmatmul.f32.gmra.mxu0 %v1496_v57  ;;  %v3929_v8 = vpop.f32.mrf.mxu2 }
 0x46b   : > { %2524 = vmatmul.msk.f32.gmra.mxu2 %vm618_vm0, %v2613_v5 }
 0x46f   : > { %v1615_v11 = vpop.f32.mrf.mxu3  ;;  %v3911_v26 = vpop.f32.mrf.mxu1 }
 0x470   : > { %v1616_v19 = vadd.f32 %v3646_v62, %v1615_v11 }
 0x472   : > { %1747 = vmatmul.f32.gmra.mxu1 %v1616_v19  ;;  %2068 = vmatmul.f32.gmra.mxu0 %v1497_v30 }
 0x473   : > { %2525 = vmatmul.msk.f32.gmra.mxu2 %vm618_vm0, %v2614_v10  ;;  %v4011_v10 = vld [vmem:[%s4249_s14] ss:$0 sm:$0xff] }
 0x477   : > { %v1618_v57 = vpop.f32.mrf.mxu3  ;;  %v3922_v53 = vpop.f32.mrf.mxu1 }
 0x478   : > { %v1619_v4 = vadd.f32 %v3646_v62, %v1618_v57 }
 0x47a   : > { %1750 = vmatmul.f32.gmra.mxu1 %v1619_v4  ;;  %2071 = vmatmul.f32.gmra.mxu0 %v1498_v52 }
 0x47f   : > { %v1621_v54 = vpop.f32.mrf.mxu3  ;;  %v3933_v30 = vpop.f32.mrf.mxu1 }
 0x480   : > { %v1622_v9 = vadd.f32 %v3646_v62, %v1621_v54 }
 0x482   : > { %1753 = vmatmul.f32.gmra.mxu1 %v1622_v9  ;;  %2074 = vmatmul.f32.gmra.mxu0 %v1499_v6 }
 0x487   : > { %v1624_v39 = vpop.f32.mrf.mxu3  ;;  %v3940_v52 = vpop.f32.mrf.mxu1 }
 0x488   : > { %v1625_v61 = vadd.f32 %v3646_v62, %v1624_v39  ;;  %v1790_v39 = vadd.f32 %v3849_v42, %v3833_v40 }
 0x48a   : > { %1756 = vmatmul.f32.gmra.mxu1 %v1625_v61  ;;  %2077 = vmatmul.f32.gmra.mxu0 %v1500_v15  ;;  %v1886_v43 = vadd.f32 %v4011_v10, %v1790_v39 }
 0x48f   : > { %v1627_v16 = vpop.f32.mrf.mxu3  ;;  %v3948_v2 = vpop.f32.mrf.mxu1 }
 0x490   : > { %v1628_v6 = vadd.f32 %v3646_v62, %v1627_v16  ;;  %v1810_v16 = vpop.f32.mrf.mxu2 }
 0x491   : > { %v1811_v39 = vadd.f32 %v1810_v16, %v3897_v49 }
 0x492   : > { %1759 = vmatmul.f32.gmra.mxu1 %v1628_v6  ;;  %2080 = vmatmul.f32.gmra.mxu0 %v1501_v31  ;;  %v1951_v31 = vld [vmem:[%s4250_s15 + $0x10] sm:$0xff]  ;;  %v1918_v6 = vmax.f32 %v1886_v43, 0.0 }
 0x493   : > { %2197 = vmatpush.msra.mxu3 %v1951_v31 }
 0x497   : > { %v1630_v12 = vpop.f32.mrf.mxu3  ;;  %v3955_v1 = vpop.f32.mrf.mxu1 }
 0x498   : > { %v1631_v15 = vadd.f32 %v3646_v62, %v1630_v12  ;;  %v1793_v12 = vadd.f32 %v3859_v37, %v3840_v33 }
 0x49a   : > { %1762 = vmatmul.f32.gmra.mxu1 %v1631_v15  ;;  %2083 = vmatmul.f32.gmra.mxu0 %v1502_v56 }
 0x49f   : > { %v1633_v34 = vpop.f32.mrf.mxu3  ;;  %v3962_v58 = vpop.f32.mrf.mxu1 }
 0x4a0   : > { %v1634_v59 = vadd.f32 %v3646_v62, %v1633_v34  ;;  %v1950_v62 = vld [vmem:[%s4250_s15 + $0x8] sm:$0xff]  ;;  %v1796_v34 = vadd.f32 %v3875_v50, %v3847_v28 }
 0x4a1   : > { %2198 = vmatpush.msra.mxu3 %v1950_v62  ;;  %v1802_v62 = vadd.f32 %v3901_v45, %v3868_v22 }
 0x4a2   : > { %1765 = vmatmul.f32.gmra.mxu1 %v1634_v59  ;;  %v1813_v59 = vpop.f32.mrf.mxu2  ;;  %v1888_v40 = vadd.f32 %v4011_v10, %v1796_v34 }
 0x4a3   : > { %2199 = vmatpush.msra.mxu3 %v1949_v46  ;;  %v1890_v28 = vadd.f32 %v4011_v10, %v1802_v62  ;;  %v1814_v43 = vadd.f32 %v1813_v59, %v3911_v26 }
 0x4a4   : > { %v1920_v42 = vmax.f32 %v1888_v40, 0.0 }
 0x4a5   : > { %v1922_v46 = vmax.f32 %v1890_v28, 0.0 }
 0x4a7   : > { %v3965_v47 = vpop.f32.mrf.mxu1 }
 0x4aa   : > { %2494 = vmatmul.msk.f32.vlgmr.msrb.gmra.mxu1 %vm618_vm0, %v2615_v63  ;;  %v1799_v63 = vadd.f32 %v3888_v44, %v3856_v3  ;;  %v1816_v33 = vpop.f32.mrf.mxu2 }
 0x4ac   : > { %v1889_v37 = vadd.f32 %v4011_v10, %v1799_v63 }
 0x4ae   : > { %v1921_v31 = vmax.f32 %v1889_v37, 0.0 }
 0x4af   : > { %v3972_v0 = vpop.f32.mrf.mxu1 }
 0x4b2   : > { %v1819_v50 = vpop.f32.mrf.mxu2 }
 0x4b7   : > { %v3974_v7 = vpop.f32.mrf.mxu1 }
 0x4ba   : > { %v1822_v44 = vpop.f32.mrf.mxu2 }
 0x4bb   : > { %v1823_v40 = vadd.f32 %v1822_v44, %v3940_v52 }
 0x4bf   : > { %v3976_v56 = vpop.f32.mrf.mxu1 }
 0x4c7   : > { %v3978_v24 = vpop.f32.mrf.mxu1 }
 0x4cf   : > { %v3983_v36 = vpop.f32.mrf.mxu1 }
 0x4d7   : > { %v3985_v35 = vpop.f32.mrf.mxu1 }
 0x4df   : > { %v3987_v23 = vpop.f32.mrf.mxu1 }
 0x4e7   : > { %v3989_v25 = vpop.f32.mrf.mxu1 }
 0x4ef   : > { %v3994_v60 = vpop.f32.mrf.mxu1 }
 0x4f7   : > { %v3996_v13 = vpop.f32.mrf.mxu1 }
 0x4ff   : > { %v3998_v21 = vpop.f32.mrf.mxu1 }
 0x507   : > { %v4000_v11 = vpop.f32.mrf.mxu1 }
 0x50f   : > { %v4002_v19 = vpop.f32.mrf.mxu1 }
 0x517   : > { %v4004_v5 = vpop.f32.mrf.mxu1 }
 0x51f   : > { %v4006_v57 = vpop.f32.mrf.mxu1 }
 0x527   : > { %v1786_v4 = vpop.f32.mrf.mxu1 }
 0x528   : > { %v1787_v54 = vadd.f32 %v1786_v4, %v3823_v18  ;;  %v1887_v18 = vadd.f32 %v4011_v10, %v1793_v12  ;;  %v1805_v4 = vadd.f32 %v3916_v29, %v3879_v27  ;;  %v1893_v27 = vadd.f32 %v4011_v10, %v1811_v39 }
 0x529   : > { %v1817_v12 = vadd.f32 %v1816_v33, %v3922_v53  ;;  %v1897_v53 = vadd.f32 %v4011_v10, %v1823_v40 }
 0x52a   : > { %v1885_v9 = vadd.f32 %v4011_v10, %v1787_v54  ;;  %v1919_v15 = vmax.f32 %v1887_v18, 0.0  ;;  %v1891_v3 = vadd.f32 %v4011_v10, %v1805_v4  ;;  %v1925_v29 = vmax.f32 %v1893_v27, 0.0 }
 0x52b   : > { %v1895_v49 = vadd.f32 %v4011_v10, %v1817_v12 }
 0x52c   : > { %v1917_v61 = vmax.f32 %v1885_v9, 0.0  ;;  %v1923_v54 = vmax.f32 %v1891_v3, 0.0  ;;  %v1808_v9 = vadd.f32 %v3929_v8, %v3890_v48  ;;  %v1894_v48 = vadd.f32 %v4011_v10, %v1814_v43 }
 0x52d   : > { %v1927_v18 = vmax.f32 %v1895_v49, 0.0 }
 0x52e   : > { %2526 = vmatmul.msk.f32.vlgmr.msra.gmra.mxu3 %vm2087_vm1, %v1917_v61  ;;  %v1892_v22 = vadd.f32 %v4011_v10, %v1808_v9  ;;  %v1825_v61 = vpop.f32.mrf.mxu2  ;;  %v1926_v8 = vmax.f32 %v1894_v48, 0.0 }
 0x52f   : > { %v1826_v63 = vadd.f32 %v1825_v61, %v3948_v2 }
 0x530   : > { %v1924_v45 = vmax.f32 %v1892_v22, 0.0  ;;  %v4076_v22 = vld [vmem:[%s4252_s17] ss:$0 sm:$0xff] }
 0x536   : > { %2527 = vmatmul.msk.f32.gmra.mxu3 %vm2087_vm1, %v1918_v6  ;;  %v1828_v6 = vpop.f32.mrf.mxu2 }
 0x53e   : > { %2528 = vmatmul.msk.f32.gmra.mxu3 %vm2087_vm1, %v1919_v15  ;;  %v1831_v16 = vpop.f32.mrf.mxu2  ;;  %v1820_v15 = vadd.f32 %v1819_v50, %v3933_v30  ;;  %v1898_v30 = vadd.f32 %v4011_v10, %v1826_v63 }
 0x53f   : > { %v1832_v50 = vadd.f32 %v1831_v16, %v3962_v58 }
 0x540   : > { %v1896_v26 = vadd.f32 %v4011_v10, %v1820_v15  ;;  %v1930_v37 = vmax.f32 %v1898_v30, 0.0 }
 0x541   : > { %v1900_v2 = vadd.f32 %v4011_v10, %v1832_v50 }
 0x542   : > { %v1928_v59 = vmax.f32 %v1896_v26, 0.0 }
 0x543   : > { %v1932_v4 = vmax.f32 %v1900_v2, 0.0 }
 0x546   : > { %2529 = vmatmul.msk.f32.gmra.mxu3 %vm2087_vm1, %v1920_v42  ;;  %v1834_v34 = vpop.f32.mrf.mxu2  ;;  %v1929_v42 = vmax.f32 %v1897_v53, 0.0 }
 0x547   : > { %v1835_v3 = vadd.f32 %v1834_v34, %v3965_v47 }
 0x54e   : > { %2530 = vmatmul.msk.f32.gmra.mxu3 %vm2087_vm1, %v1921_v31  ;;  %v1837_v33 = vpop.f32.mrf.mxu2  ;;  %v1829_v31 = vadd.f32 %v1828_v6, %v3955_v1  ;;  %v1901_v1 = vadd.f32 %v4011_v10, %v1835_v3 }
 0x54f   : > { %v1838_v9 = vadd.f32 %v1837_v33, %v3972_v0 }
 0x550   : > { %v1899_v52 = vadd.f32 %v4011_v10, %v1829_v31 }
 0x551   : > { %v1902_v58 = vadd.f32 %v4011_v10, %v1838_v9 }
 0x552   : > { %v1931_v28 = vmax.f32 %v1899_v52, 0.0 }
 0x553   : > { %v1934_v0 = vmax.f32 %v1902_v58, 0.0 }
 0x556   : > { %2531 = vmatmul.msk.f32.gmra.mxu3 %vm2087_vm1, %v1922_v46  ;;  %v1840_v62 = vpop.f32.mrf.mxu2 }
 0x557   : > { %v1841_v39 = vadd.f32 %v1840_v62, %v3974_v7 }
 0x55e   : > { %2532 = vmatmul.msk.f32.gmra.mxu3 %vm2087_vm1, %v1923_v54  ;;  %v1843_v46 = vpop.f32.mrf.mxu2  ;;  %v1933_v54 = vmax.f32 %v1901_v1, 0.0 }
 0x55f   : > { %v1844_v48 = vadd.f32 %v1843_v46, %v3976_v56 }
 0x561   : > { %v1904_v12 = vadd.f32 %v4011_v10, %v1844_v48 }
 0x563   : > { %v1936_v15 = vmax.f32 %v1904_v12, 0.0 }
 0x566   : > { %2533 = vmatmul.msk.f32.gmra.mxu3 %vm2087_vm1, %v1924_v45  ;;  %v1846_v44 = vpop.f32.mrf.mxu2 }
 0x56e   : > { %2534 = vmatmul.msk.f32.gmra.mxu3 %vm2087_vm1, %v1925_v29  ;;  %v1849_v27 = vpop.f32.mrf.mxu2 }
 0x576   : > { %2535 = vmatmul.msk.f32.gmra.mxu3 %vm2087_vm1, %v1926_v8  ;;  %v1852_v7 = vpop.f32.mrf.mxu2 }
 0x57e   : > { %2536 = vmatmul.msk.f32.gmra.mxu3 %vm2087_vm1, %v1927_v18  ;;  %v2015_v18 = vpop.f32.mrf.mxu0  ;;  %v1855_v34 = vpop.f32.mrf.mxu2 }
 0x586   : > { %2537 = vmatmul.msk.f32.gmra.mxu3 %vm2087_vm1, %v1928_v59  ;;  %v2018_v63 = vpop.f32.mrf.mxu0 }
 0x58e   : > { %2538 = vmatmul.msk.f32.gmra.mxu3 %vm2087_vm1, %v1929_v42 }
 0x596   : > { %2539 = vmatmul.msk.f32.gmra.mxu3 %vm2087_vm1, %v1930_v37  ;;  %v1858_v37 = vpop.f32.mrf.mxu2 }
 0x59e   : > { %2540 = vmatmul.msk.f32.gmra.mxu3 %vm2087_vm1, %v1931_v28 }
 0x5a6   : > { %2541 = vmatmul.msk.f32.gmra.mxu3 %vm2087_vm1, %v1932_v4  ;;  %v1861_v4 = vpop.f32.mrf.mxu2 }
 0x5ae   : > { %2542 = vmatmul.msk.f32.gmra.mxu3 %vm2087_vm1, %v1933_v54 }
 0x5b1   : > { %v2201_v45 = vpop.f32.mrf.mxu3 }
 0x5b2   : > { %v2202_v47 = vadd.f32 %v2201_v45, %v3873_v41  ;;  %v1903_v41 = vadd.f32 %v4011_v10, %v1841_v39 }
 0x5b4   : > { %v2300_v61 = vadd.f32 %v4076_v22, %v2202_v47  ;;  %v1935_v6 = vmax.f32 %v1903_v41, 0.0 }
 0x5b6   : > { %2333 = vst.msk [vmem:[%s4084_s22] sm:$0xff] %vm2332_vm2, %v2300_v61  ;;  %2543 = vmatmul.msk.f32.gmra.mxu3 %vm2087_vm1, %v1934_v0 }
 0x5b9   : > { %v2204_v29 = vpop.f32.mrf.mxu3 }
 0x5ba   : > { %v2205_v43 = vadd.f32 %v2204_v29, %v3886_v51  ;;  %v1847_v51 = vadd.f32 %v1846_v44, %v3978_v24 }
 0x5bc   : > { %v2301_v8 = vadd.f32 %v4076_v22, %v2205_v43  ;;  %v1905_v56 = vadd.f32 %v4011_v10, %v1847_v51 }
 0x5be   : > { %2334 = vst.msk [vmem:[%s4084_s22 + $0x8] sm:$0xff] %vm2332_vm2, %v2301_v8  ;;  %2544 = vmatmul.msk.f32.gmra.mxu3 %vm2087_vm1, %v1935_v6  ;;  %v1937_v53 = vmax.f32 %v1905_v56, 0.0 }
 0x5c1   : > { %v2207_v49 = vpop.f32.mrf.mxu3 }
 0x5c2   : > { %v2208_v16 = vadd.f32 %v2207_v49, %v3899_v20  ;;  %v1850_v20 = vadd.f32 %v1849_v27, %v3983_v36  ;;  %v2021_v36 = vpop.f32.mrf.mxu0 }
 0x5c4   : > { %v2302_v26 = vadd.f32 %v4076_v22, %v2208_v16  ;;  %v1906_v24 = vadd.f32 %v4011_v10, %v1850_v20 }
 0x5c6   : > { %2335 = vst.msk [vmem:[%s4084_s22 + $0x10] sm:$0xff] %vm2332_vm2, %v2302_v26  ;;  %2545 = vmatmul.msk.f32.gmra.mxu3 %vm2087_vm1, %v1936_v15  ;;  %v1938_v31 = vmax.f32 %v1906_v24, 0.0 }
 0x5c9   : > { %v2210_v59 = vpop.f32.mrf.mxu3 }
 0x5ca   : > { %v2211_v40 = vadd.f32 %v2210_v59, %v3914_v17  ;;  %v1853_v17 = vadd.f32 %v1852_v7, %v3985_v35  ;;  %v2024_v3 = vpop.f32.mrf.mxu0 }
 0x5cc   : > { %v2303_v42 = vadd.f32 %v4076_v22, %v2211_v40  ;;  %v1907_v52 = vadd.f32 %v4011_v10, %v1853_v17 }
 0x5ce   : > { %2336 = vst.msk [vmem:[%s4084_s22 + $0x18] sm:$0xff] %vm2332_vm2, %v2303_v42  ;;  %2546 = vmatmul.msk.f32.gmra.mxu3 %vm2087_vm1, %v1937_v53  ;;  %v1939_v2 = vmax.f32 %v1907_v52, 0.0 }
 0x5d1   : > { %v2213_v33 = vpop.f32.mrf.mxu3 }
 0x5d2   : > { %v2214_v30 = vadd.f32 %v2213_v33, %v3927_v32  ;;  %v1856_v32 = vadd.f32 %v1855_v34, %v3987_v23  ;;  %v1864_v23 = vpop.f32.mrf.mxu2  ;;  %v2027_v0 = vpop.f32.mrf.mxu0 }
 0x5d3   : > { %v1865_v6 = vadd.f32 %v1864_v23, %v3996_v13 }
 0x5d4   : > { %v2304_v62 = vadd.f32 %v4076_v22, %v2214_v30  ;;  %v1908_v35 = vadd.f32 %v4011_v10, %v1856_v32 }
 0x5d6   : > { %2337 = vst.msk [vmem:[%s4084_s22 + $0x20] sm:$0xff] %vm2332_vm2, %v2304_v62  ;;  %2547 = vmatmul.msk.f32.gmra.mxu3 %vm2087_vm1, %v1938_v31  ;;  %v1940_v54 = vmax.f32 %v1908_v35, 0.0 }
 0x5d9   : > { %v2216_v28 = vpop.f32.mrf.mxu3 }
 0x5da   : > { %v2217_v50 = vadd.f32 %v2216_v28, %v3938_v38  ;;  %v1859_v38 = vadd.f32 %v1858_v37, %v3989_v25  ;;  %v1867_v27 = vpop.f32.mrf.mxu2  ;;  %v2030_v48 = vpop.f32.mrf.mxu0 }
 0x5db   : > { %v1868_v16 = vadd.f32 %v1867_v27, %v3998_v21 }
 0x5dc   : > { %v2305_v46 = vadd.f32 %v4076_v22, %v2217_v50  ;;  %v1909_v58 = vadd.f32 %v4011_v10, %v1859_v38 }
 0x5dd   : > { %v1912_v15 = vadd.f32 %v4011_v10, %v1868_v16 }
 0x5de   : > { %2338 = vst.msk [vmem:[%s4084_s22 + $0x28] sm:$0xff] %vm2332_vm2, %v2305_v46  ;;  %2548 = vmatmul.msk.f32.gmra.mxu3 %vm2087_vm1, %v1939_v2  ;;  %v1941_v39 = vmax.f32 %v1909_v58, 0.0 }
 0x5df   : > { %v1944_v56 = vmax.f32 %v1912_v15, 0.0 }
 0x5e1   : > { %v2219_v1 = vpop.f32.mrf.mxu3 }
 0x5e2   : > { %v2220_v44 = vadd.f32 %v2219_v1, %v3950_v14  ;;  %v1862_v14 = vadd.f32 %v1861_v4, %v3994_v60  ;;  %v1911_v60 = vadd.f32 %v4011_v10, %v1865_v6  ;;  %v1870_v12 = vpop.f32.mrf.mxu2  ;;  %v2033_v13 = vpop.f32.mrf.mxu0 }
 0x5e3   : > { %v1871_v34 = vadd.f32 %v1870_v12, %v4000_v11 }
 0x5e4   : > { %v2306_v9 = vadd.f32 %v4076_v22, %v2220_v44  ;;  %v1910_v25 = vadd.f32 %v4011_v10, %v1862_v14  ;;  %v1943_v49 = vmax.f32 %v1911_v60, 0.0 }
 0x5e5   : > { %v1913_v21 = vadd.f32 %v4011_v10, %v1871_v34 }
 0x5e6   : > { %2339 = vst.msk [vmem:[%s4084_s22 + $0x30] sm:$0xff] %vm2332_vm2, %v2306_v9  ;;  %2549 = vmatmul.msk.f32.gmra.mxu3 %vm2087_vm1, %v1940_v54  ;;  %v1942_v43 = vmax.f32 %v1910_v25, 0.0 }
 0x5e9   : > { %v2222_v45 = vpop.f32.mrf.mxu3 }
 0x5ea   : > { %v2223_v47 = vadd.f32 %v2222_v45, %v3958_v55  ;;  %v1873_v40 = vpop.f32.mrf.mxu2  ;;  %v2036_v53 = vpop.f32.mrf.mxu0 }
 0x5eb   : > { %v1874_v24 = vadd.f32 %v1873_v40, %v4002_v19 }
 0x5ec   : > { %v2307_v61 = vadd.f32 %v4076_v22, %v2223_v47 }
 0x5ed   : > { %v1914_v30 = vadd.f32 %v4011_v10, %v1874_v24 }
 0x5ee   : > { %2340 = vst.msk [vmem:[%s4084_s22 + $0x38] sm:$0xff] %vm2332_vm2, %v2307_v61  ;;  %2550 = vmatmul.msk.f32.gmra.mxu3 %vm2087_vm1, %v1941_v39 }
 0x5ef   : > { %v1946_v62 = vmax.f32 %v1914_v30, 0.0 }
 0x5f1   : > { %v2225_v41 = vpop.f32.mrf.mxu3 }
 0x5f2   : > { %v2226_v29 = vadd.f32 %v2225_v41, %v2015_v18  ;;  %v1876_v11 = vpop.f32.mrf.mxu2  ;;  %v2039_v17 = vpop.f32.mrf.mxu0 }
 0x5f4   : > { %v2308_v55 = vadd.f32 %v4076_v22, %v2226_v29 }
 0x5f6   : > { %2341 = vst.msk [vmem:[%s4084_s22 + $0x40] sm:$0xff] %vm2332_vm2, %v2308_v55  ;;  %2551 = vmatmul.msk.f32.gmra.mxu3 %vm2087_vm1, %v1942_v43 }
 0x5f9   : > { %v2228_v8 = vpop.f32.mrf.mxu3 }
 0x5fa   : > { %v2229_v7 = vadd.f32 %v2228_v8, %v2018_v63  ;;  %v1945_v63 = vmax.f32 %v1913_v21, 0.0  ;;  %v1879_v28 = vpop.f32.mrf.mxu2  ;;  %v2042_v35 = vpop.f32.mrf.mxu0 }
 0x5fb   : > { %v1880_v46 = vadd.f32 %v1879_v28, %v4006_v57 }
 0x5fc   : > { %v2309_v18 = vadd.f32 %v4076_v22, %v2229_v7 }
 0x5fe   : > { %2342 = vst.msk [vmem:[%s4084_s22 + $0x48] sm:$0xff] %vm2332_vm2, %v2309_v18  ;;  %2552 = vmatmul.msk.f32.gmra.mxu3 %vm2087_vm1, %v1943_v49 }
 0x601   : > { %v2231_v51 = vpop.f32.mrf.mxu3 }
 0x602   : > { %v2232_v26 = vadd.f32 %v2231_v51, %v2021_v36  ;;  %v1877_v36 = vadd.f32 %v1876_v11, %v4004_v5  ;;  %v1916_v5 = vadd.f32 %v4011_v10, %v1880_v46  ;;  %v2045_v57 = vpop.f32.mrf.mxu0 }
 0x604   : > { %v2310_v59 = vadd.f32 %v4076_v22, %v2232_v26  ;;  %v1915_v19 = vadd.f32 %v4011_v10, %v1877_v36  ;;  %v1948_v44 = vmax.f32 %v1916_v5, 0.0 }
 0x606   : > { %2343 = vst.msk [vmem:[%s4084_s22 + $0x50] sm:$0xff] %vm2332_vm2, %v2310_v59  ;;  %2553 = vmatmul.msk.f32.gmra.mxu3 %vm2087_vm1, %v1944_v56  ;;  %v1947_v32 = vmax.f32 %v1915_v19, 0.0 }
 0x609   : > { %v2234_v20 = vpop.f32.mrf.mxu3 }
 0x60a   : > { %v2235_v42 = vadd.f32 %v2234_v20, %v2024_v3  ;;  %v2048_v10 = vpop.f32.mrf.mxu0 }
 0x60c   : > { %v2311_v33 = vadd.f32 %v4076_v22, %v2235_v42 }
 0x60e   : > { %2344 = vst.msk [vmem:[%s4084_s22 + $0x58] sm:$0xff] %vm2332_vm2, %v2311_v33  ;;  %2554 = vmatmul.msk.f32.gmra.mxu3 %vm2087_vm1, %v1945_v63 }
 0x611   : > { %v2237_v37 = vpop.f32.mrf.mxu3 }
 0x612   : > { %v2238_v31 = vadd.f32 %v2237_v37, %v2027_v0  ;;  %v2051_v14 = vpop.f32.mrf.mxu0 }
 0x614   : > { %v2312_v52 = vadd.f32 %v4076_v22, %v2238_v31 }
 0x616   : > { %2345 = vst.msk [vmem:[%s4084_s22 + $0x60] sm:$0xff] %vm2332_vm2, %v2312_v52  ;;  %2555 = vmatmul.msk.f32.gmra.mxu3 %vm2087_vm1, %v1946_v62 }
 0x619   : > { %v2240_v50 = vpop.f32.mrf.mxu3 }
 0x61a   : > { %v2241_v2 = vadd.f32 %v2240_v50, %v2030_v48  ;;  %v2054_v29 = vpop.f32.mrf.mxu0 }
 0x61c   : > { %v2313_v4 = vadd.f32 %v4076_v22, %v2241_v2 }
 0x61e   : > { %2346 = vst.msk [vmem:[%s4084_s22 + $0x68] sm:$0xff] %vm2332_vm2, %v2313_v4  ;;  %2556 = vmatmul.msk.f32.gmra.mxu3 %vm2087_vm1, %v1947_v32 }
 0x621   : > { %v2243_v3 = vpop.f32.mrf.mxu3 }
 0x622   : > { %v2244_v1 = vadd.f32 %v2243_v3, %v2033_v13  ;;  %v2057_v48 = vpop.f32.mrf.mxu0 }
 0x624   : > { %v2314_v54 = vadd.f32 %v4076_v22, %v2244_v1 }
 0x626   : > { %2347 = vst.msk [vmem:[%s4084_s22 + $0x70] sm:$0xff] %vm2332_vm2, %v2314_v54  ;;  %2557 = vmatmul.msk.f32.gmra.mxu3 %vm2087_vm1, %v1948_v44 }
 0x629   : > { %v2246_v38 = vpop.f32.mrf.mxu3 }
 0x62a   : > { %v2247_v9 = vadd.f32 %v2246_v38, %v2036_v53  ;;  %v2060_v12 = vpop.f32.mrf.mxu0 }
 0x62c   : > { %v2315_v23 = vadd.f32 %v4076_v22, %v2247_v9 }
 0x62e   : > { %2348 = vst.msk [vmem:[%s4084_s22 + $0x78] sm:$0xff] %vm2332_vm2, %v2315_v23 }
 0x631   : > { %v2249_v58 = vpop.f32.mrf.mxu3 }
 0x632   : > { %v2250_v45 = vadd.f32 %v2249_v58, %v2039_v17  ;;  %v2063_v51 = vpop.f32.mrf.mxu0 }
 0x634   : > { %v2316_v47 = vadd.f32 %v4076_v22, %v2250_v45 }
 0x636   : > { %2349 = vst.msk [vmem:[%s4084_s22 + $0x80] sm:$0xff] %vm2332_vm2, %v2316_v47 }
 0x639   : > { %v2252_v0 = vpop.f32.mrf.mxu3 }
 0x63a   : > { %v2253_v39 = vadd.f32 %v2252_v0, %v2042_v35  ;;  %v2066_v40 = vpop.f32.mrf.mxu0 }
 0x63c   : > { %v2317_v61 = vadd.f32 %v4076_v22, %v2253_v39 }
 0x63e   : > { %2350 = vst.msk [vmem:[%s4084_s22 + $0x88] sm:$0xff] %vm2332_vm2, %v2317_v61 }
 0x641   : > { %v2255_v25 = vpop.f32.mrf.mxu3 }
 0x642   : > { %v2256_v27 = vadd.f32 %v2255_v25, %v2045_v57  ;;  %v2069_v42 = vpop.f32.mrf.mxu0 }
 0x644   : > { %v2318_v41 = vadd.f32 %v4076_v22, %v2256_v27 }
 0x646   : > { %2351 = vst.msk [vmem:[%s4084_s22 + $0x90] sm:$0xff] %vm2332_vm2, %v2318_v41 }
 0x649   : > { %v2258_v43 = vpop.f32.mrf.mxu3 }
 0x64a   : > { %v2259_v6 = vadd.f32 %v2258_v43, %v2048_v10  ;;  %v2072_v11 = vpop.f32.mrf.mxu0 }
 0x64c   : > { %v2319_v55 = vadd.f32 %v4076_v22, %v2259_v6 }
 0x64e   : > { %2352 = vst.msk [vmem:[%s4084_s22 + $0x98] sm:$0xff] %vm2332_vm2, %v2319_v55 }
 0x651   : > { %v2261_v60 = vpop.f32.mrf.mxu3 }
 0x652   : > { %v2262_v8 = vadd.f32 %v2261_v60, %v2051_v14  ;;  %v2075_v36 = vpop.f32.mrf.mxu0 }
 0x654   : > { %v2320_v7 = vadd.f32 %v4076_v22, %v2262_v8 }
 0x656   : > { %2353 = vst.msk [vmem:[%s4084_s22 + $0xa0] sm:$0xff] %vm2332_vm2, %v2320_v7 }
 0x659   : > { %v2264_v49 = vpop.f32.mrf.mxu3 }
 0x65a   : > { %v2265_v16 = vadd.f32 %v2264_v49, %v2054_v29  ;;  %v2078_v2 = vpop.f32.mrf.mxu0 }
 0x65c   : > { %v2321_v18 = vadd.f32 %v4076_v22, %v2265_v16 }
 0x65e   : > { %2354 = vst.msk [vmem:[%s4084_s22 + $0xa8] sm:$0xff] %vm2332_vm2, %v2321_v18 }
 0x661   : > { %v2267_v13 = vpop.f32.mrf.mxu3 }
 0x662   : > { %v2268_v15 = vadd.f32 %v2267_v13, %v2057_v48  ;;  %v2081_v35 = vpop.f32.mrf.mxu0 }
 0x664   : > { %v2322_v26 = vadd.f32 %v4076_v22, %v2268_v15 }
 0x666   : > { %2355 = vst.msk [vmem:[%s4084_s22 + $0xb0] sm:$0xff] %vm2332_vm2, %v2322_v26 }
 0x669   : > { %v2270_v56 = vpop.f32.mrf.mxu3 }
 0x66a   : > { %v2271_v34 = vadd.f32 %v2270_v56, %v2060_v12  ;;  %v2084_v44 = vpop.f32.mrf.mxu0 }
 0x66c   : > { %v2323_v59 = vadd.f32 %v4076_v22, %v2271_v34 }
 0x66e   : > { %2356 = vst.msk [vmem:[%s4084_s22 + $0xb8] sm:$0xff] %vm2332_vm2, %v2323_v59 }
 0x671   : > { %v2273_v21 = vpop.f32.mrf.mxu3 }
 0x672   : > { %v2274_v53 = vadd.f32 %v2273_v21, %v2063_v51 }
 0x674   : > { %v2324_v20 = vadd.f32 %v4076_v22, %v2274_v53 }
 0x676   : > { %2357 = vst.msk [vmem:[%s4084_s22 + $0xc0] sm:$0xff] %vm2332_vm2, %v2324_v20 }
 0x679   : > { %v2276_v63 = vpop.f32.mrf.mxu3 }
 0x67a   : > { %v2277_v24 = vadd.f32 %v2276_v63, %v2066_v40 }
 0x67c   : > { %v2325_v33 = vadd.f32 %v4076_v22, %v2277_v24 }
 0x67e   : > { %2358 = vst.msk [vmem:[%s4084_s22 + $0xc8] sm:$0xff] %vm2332_vm2, %v2325_v33 }
 0x681   : > { %v2279_v30 = vpop.f32.mrf.mxu3 }
 0x682   : > { %v2280_v37 = vadd.f32 %v2279_v30, %v2069_v42 }
 0x684   : > { %v2326_v31 = vadd.f32 %v4076_v22, %v2280_v37 }
 0x686   : > { %2359 = vst.msk [vmem:[%s4084_s22 + $0xd0] sm:$0xff] %vm2332_vm2, %v2326_v31 }
 0x689   : > { %v2282_v17 = vpop.f32.mrf.mxu3 }
 0x68a   : > { %v2283_v62 = vadd.f32 %v2282_v17, %v2072_v11 }
 0x68c   : > { %v2327_v52 = vadd.f32 %v4076_v22, %v2283_v62 }
 0x68e   : > { %2360 = vst.msk [vmem:[%s4084_s22 + $0xd8] sm:$0xff] %vm2332_vm2, %v2327_v52 }
 0x691   : > { %v2285_v19 = vpop.f32.mrf.mxu3 }
 0x692   : > { %v2286_v28 = vadd.f32 %v2285_v19, %v2075_v36 }
 0x694   : > { %v2328_v50 = vadd.f32 %v4076_v22, %v2286_v28 }
 0x696   : > { %2361 = vst.msk [vmem:[%s4084_s22 + $0xe0] sm:$0xff] %vm2332_vm2, %v2328_v50 }
 0x699   : > { %v2288_v32 = vpop.f32.mrf.mxu3 }
 0x69a   : > { %v2289_v46 = vadd.f32 %v2288_v32, %v2078_v2 }
 0x69c   : > { %v2329_v4 = vadd.f32 %v4076_v22, %v2289_v46 }
 0x69e   : > { %2362 = vst.msk [vmem:[%s4084_s22 + $0xe8] sm:$0xff] %vm2332_vm2, %v2329_v4 }
 0x6a1   : > { %v2291_v5 = vpop.f32.mrf.mxu3 }
 0x6a2   : > { %v2292_v3 = vadd.f32 %v2291_v5, %v2081_v35 }
 0x6a4   : > { %v2330_v1 = vadd.f32 %v4076_v22, %v2292_v3 }
 0x6a6   : > { %2363 = vst.msk [vmem:[%s4084_s22 + $0xf0] sm:$0xff] %vm2332_vm2, %v2330_v1 }
 0x6a9   : > { %v2294_v54 = vpop.f32.mrf.mxu3 }
 0x6aa   : > { %v2295_v57 = vadd.f32 %v2294_v54, %v2084_v44 }
 0x6ac   : > { %v2331_v38 = vadd.f32 %v4076_v22, %v2295_v57 }
 0x6ae   : > { %2364 = vst.msk [vmem:[%s4084_s22 + $0xf8] sm:$0xff] %vm2332_vm2, %v2331_v38 }
 0x6af PF: > { %s28_s27 = sadd.s32 1, %s2622_s27  }
 0x6b0   : > { %p25_p4 = scmp.ge.s32.totalorder %s28_s27, 6  }
 0x6b2   :  { %27 = sbr.rel (!%p25_p4) target bundleno = 4 (0x4), region = 122 }

</bundles_post_ra>
